<compile_context>
chip_gen: v7x
topology: tpu7x:2x2x1
jax: 0.10.0
libtpu: 0.0.40
codegen_flags: <defaults>
</compile_context>

<pallas_src>
import functools
import math

import jax
import jax.numpy as jnp
from jax import lax
from jax.experimental import pallas as pl
from jax.experimental.pallas import tpu as pltpu


# ---------------------------------------------------------------------------
# in-kernel math helpers (pure jnp, traced inside the Pallas kernel body)
# ---------------------------------------------------------------------------
def _layernorm(x, gamma, beta, eps=1e-5):
    mu = jnp.mean(x, axis=-1, keepdims=True)
    var = jnp.mean(jnp.square(x - mu), axis=-1, keepdims=True)
    return (x - mu) * lax.rsqrt(var + eps) * gamma + beta


def _gelu_exact(x):
    # torch.nn.GELU default: 0.5 * x * (1 + erf(x / sqrt(2)))
    return 0.5 * x * (1.0 + lax.erf(x * 0.7071067811865476))


# ---------------------------------------------------------------------------
# Pallas kernel: one (batch, query-tile) per grid step, fully fused in VMEM
# ---------------------------------------------------------------------------
def _transformer_block_kernel(
    x_ref,
    ln1g_ref, ln1b_ref,
    wq_ref, bq_ref, wk_ref, bk_ref, wv_ref, bv_ref, wo_ref, bo_ref,
    ln2g_ref, ln2b_ref,
    w1_ref, b1_ref, w2_ref, b2_ref,
    o_ref,
    attn_scratch,
    *, heads, tq, hc):
    S = x_ref.shape[1]
    E = x_ref.shape[2]
    H = w1_ref.shape[1]
    hd = E // heads

    qi = pl.program_id(1)
    q_start = pl.multiple_of(qi * tq, tq)

    # ---- norm1 (fp32 on the VPU): full sequence for K/V, query tile for Q/residual ----
    x_full = x_ref[0].astype(jnp.float32)                                # (S, E)
    hb_full = _layernorm(x_full, ln1g_ref[0], ln1b_ref[0]).astype(jnp.bfloat16)
    x_q = x_ref[0, pl.ds(q_start, tq), :].astype(jnp.float32)            # (TQ, E)
    h_q = _layernorm(x_q, ln1g_ref[0], ln1b_ref[0]).astype(jnp.bfloat16)

    # ---- QKV projections: bf16 MXU operands, f32 accumulation.
    #      Softmax scale folded into q once; q/k/v cast to bf16 exactly once. ----
    scale = 1.0 / math.sqrt(hd)
    qb = ((jnp.dot(h_q, wq_ref[...], preferred_element_type=jnp.float32)
           + bq_ref[0]) * scale).astype(jnp.bfloat16)                    # (TQ, E)
    kb = (jnp.dot(hb_full, wk_ref[...], preferred_element_type=jnp.float32)
          + bk_ref[0]).astype(jnp.bfloat16)                              # (S, E)
    vb = (jnp.dot(hb_full, wv_ref[...], preferred_element_type=jnp.float32)
          + bv_ref[0]).astype(jnp.bfloat16)                              # (S, E)

    # ---- per-head attention; each head writes straight into the bf16 VMEM scratch
    #      (no concatenate relayout, only one head output live at a time) ----
    for hi in range(heads):                                              # static unroll
        sl = slice(hi * hd, (hi + 1) * hd)
        # scores = q_h @ k_h^T  (contraction on head_dim, scale already folded into q)
        scores = lax.dot_general(qb[:, sl], kb[:, sl], (((1,), (1,)), ((), ())),
                                 preferred_element_type=jnp.float32)     # (TQ, S)
        scores = scores - jnp.max(scores, axis=-1, keepdims=True)
        p = jnp.exp(scores)
        p = p * pl.reciprocal(jnp.sum(p, axis=-1, keepdims=True), approx=True)
        attn_scratch[:, sl] = jnp.dot(p.astype(jnp.bfloat16), vb[:, sl],
                                      preferred_element_type=jnp.float32
                                      ).astype(jnp.bfloat16)

    # ---- single full-K output projection + residual 1 (dropout = identity) ----
    attn = jnp.dot(attn_scratch[...], wo_ref[...],
                   preferred_element_type=jnp.float32) + bo_ref[0]
    x1 = attn + x_q

    # ---- norm2 + feed-forward, tiled over the hidden dim so the (TQ, H) f32
    #      intermediate never materializes ----
    h2 = _layernorm(x1, ln2g_ref[0], ln2b_ref[0]).astype(jnp.bfloat16)
    acc = jnp.zeros((tq, E), jnp.float32)
    for c0 in range(0, H, hc):                                           # static unroll
        f = jnp.dot(h2, w1_ref[:, c0:c0 + hc],
                    preferred_element_type=jnp.float32) + b1_ref[0, c0:c0 + hc]
        f = _gelu_exact(f)            # exact erf GELU in fp32 (torch default semantics)
        acc = acc + jnp.dot(f.astype(jnp.bfloat16), w2_ref[c0:c0 + hc, :],
                            preferred_element_type=jnp.float32)
    o_ref[0] = (acc + b2_ref[0] + x1).astype(o_ref.dtype)                # residual 2


_PARAM_ORDER = (
    "ln1_g", "ln1_b",
    "wq", "bq", "wk", "bk", "wv", "bv", "wo", "bo",
    "ln2_g", "ln2_b",
    "w1", "b1", "w2", "b2",
)
_MATMUL_WEIGHTS = frozenset({"wq", "wk", "wv", "wo", "w1", "w2"})


def prepare_params(params):
    """Cast MXU weight matrices to bf16 ONCE (outside the per-call wrapper)."""
    out = dict(params)
    for name in _MATMUL_WEIGHTS:
        out[name] = params[name].astype(jnp.bfloat16)
    return out


def _invariant_spec(shape):
    # Grid-invariant params: single-buffer them.  Default double-buffering would
    # allocate 2x their VMEM although their block index never changes.
    idx = lambda b, qi: (0,) * len(shape)
    try:
        return pl.BlockSpec(shape, idx, pipeline_mode=pl.Buffered(1))
    except TypeError:  # BlockSpec without pipeline_mode support
        return pl.BlockSpec(shape, idx)


def _vmem_limit_bytes():
    # ~75% of physical VMEM: ~96 MiB on v5e/v6e (128 MiB), ~48 MiB on v7x (64 MiB).
    try:
        cap = pltpu.get_tpu_info().vmem_capacity_bytes
        return min(int(cap) * 3 // 4, 100 * 1024 * 1024)
    except Exception:
        return 64 * 1024 * 1024


def transformer_block(x, params, heads, mask=None):
    # `mask` intentionally unused: the reference torch forward never forwards it.
    B, S, E = x.shape
    H = params["w1"].shape[1]
    assert E % heads == 0, "embed_size must be divisible by heads"

    # Query-tile size: second "parallel" grid axis.  256 matches the v6e/v7x MXU,
    # 128 the v5e MXU; otherwise fall back to the whole (small) sequence.
    if S % 256 == 0:
        tq = 256
    elif S % 128 == 0:
        tq = 128
    else:
        tq = S
    nq = S // tq

    # FFN hidden-dim chunk size (avoid materializing the (TQ, H) f32 intermediate).
    hc = 512 if (H % 512 == 0 and H > 512) else H

    in_specs = [pl.BlockSpec((1, S, E), lambda b, qi: (b, 0, 0))]
    args = [x]
    for name in _PARAM_ORDER:
        p = params[name]
        if name in _MATMUL_WEIGHTS and p.dtype != jnp.bfloat16:
            p = p.astype(jnp.bfloat16)  # fallback; prefer prepare_params() once at init
        in_specs.append(_invariant_spec(p.shape))
        args.append(p)

    # Advisory cost estimate so XLA schedules around the custom call sensibly.
    flops = B * (4 * S * E * E * (1 + nq) + 4 * S * S * E + 4 * S * E * H)
    transcendentals = B * (heads * S * S + S * H)          # softmax exp + gelu erf
    bytes_accessed = (2 * B * S * E * x.dtype.itemsize
                      + sum(int(a.size) * a.dtype.itemsize for a in args[1:]))

    kernel = functools.partial(_transformer_block_kernel, heads=heads, tq=tq, hc=hc)
    return pl.pallas_call(
        kernel,
        out_shape=jax.ShapeDtypeStruct((B, S, E), x.dtype),
        grid=(B, nq),
        in_specs=in_specs,
        out_specs=pl.BlockSpec((1, tq, E), lambda b, qi: (b, qi, 0)),
        scratch_shapes=[pltpu.VMEM((tq, E), jnp.bfloat16)],   # concat-head scratch
        compiler_params=pltpu.CompilerParams(
            # (batch, query-tile) steps are independent -> shard across TensorCores
            dimension_semantics=("parallel", "parallel"),
            vmem_limit_bytes=_vmem_limit_bytes()),
        cost_estimate=pl.CostEstimate(
            flops=flops,
            transcendentals=transcendentals,
            bytes_accessed=bytes_accessed),
    )(*args)


# ---------------------------------------------------------------------------
# deterministic parameter init (synthetic; no checkpoint loading)
# ---------------------------------------------------------------------------
def init_params(key, embed_size, ff_hidden_mult=4):
    E = embed_size
    H = ff_hidden_mult * E
    ks = jax.random.split(key, 12)
    s = 0.05
    n = lambda k, shape: (s * jax.random.normal(k, shape)).astype(jnp.float32)
    return {
        "ln1_g": jnp.ones((1, E), jnp.float32),
        "ln1_b": jnp.zeros((1, E), jnp.float32),
        "wq": n(ks[0], (E, E)), "bq": n(ks[1], (1, E)),
        "wk": n(ks[2], (E, E)), "bk": n(ks[3], (1, E)),
        "wv": n(ks[4], (E, E)), "bv": n(ks[5], (1, E)),
        "wo": n(ks[6], (E, E)), "bo": n(ks[7], (1, E)),
        "ln2_g": jnp.ones((1, E), jnp.float32),
        "ln2_b": jnp.zeros((1, E), jnp.float32),
        "w1": n(ks[8], (E, H)), "b1": n(ks[9], (1, H)),
        "w2": n(ks[10], (H, E)), "b2": n(ks[11], (1, E)),
    }


# ---------------------------------------------------------------------------
# pure-JAX fp32 reference (torch-faithful math) used to sanity-check the kernel
# ---------------------------------------------------------------------------
def _ref_single(x, params, heads):
    E = x.shape[-1]
    hd = E // heads
    h = _layernorm(x, params["ln1_g"][0], params["ln1_b"][0])
    q = h @ params["wq"] + params["bq"][0]
    k = h @ params["wk"] + params["bk"][0]
    v = h @ params["wv"] + params["bv"][0]
    outs = []
    for hi in range(heads):
        sl = slice(hi * hd, (hi + 1) * hd)
        scores = (q[:, sl] @ k[:, sl].T) / math.sqrt(hd)
        p = jax.nn.softmax(scores, axis=-1)
        outs.append(p @ v[:, sl])
    attn = jnp.concatenate(outs, axis=-1) @ params["wo"] + params["bo"][0]
    x1 = attn + x
    h2 = _layernorm(x1, params["ln2_g"][0], params["ln2_b"][0])
    f = _gelu_exact(h2 @ params["w1"] + params["b1"][0]) @ params["w2"] + params["b2"][0]
    return f + x1


def transformer_block_ref(x, params, heads):
    return jax.vmap(lambda xb: _ref_single(xb, params, heads))(x)


if __name__ == "__main__":
    B, S, E, heads = 2, 16, 64, 4   # head_dim = 16, ff hidden = 256 (small test shapes)
    key = jax.random.PRNGKey(0)
    kx, kp = jax.random.split(key)
    x = jax.random.normal(kx, (B, S, E), dtype=jnp.float32)
    mask = jnp.ones((B, S), dtype=jnp.float32)   # unused, matching the torch forward
    params = init_params(kp, E)
    dev_params = prepare_params(params)          # bf16 weight cast done ONCE, outside the call

    out = transformer_block(x, dev_params, heads, mask)
    out = jax.block_until_ready(out)

    ref = transformer_block_ref(x, params, heads)
    assert out.shape == (B, S, E)
    # kernel uses bf16 MXU operands (f32 accumulate) + approx softmax reciprocal,
    # so compare against the fp32 reference with a bf16-appropriate tolerance.
    assert jnp.allclose(out, ref, atol=2e-2, rtol=2e-2), "mismatch vs reference"
    print("KERNEL_OK")
</pallas_src>

<mosaic_0001>
module attributes {stable_mosaic.version = 11 : i64} {
  func.func @_transformer_block_kernel(%arg0: i32, %arg1: i32, %arg2: memref<1x16x64xf32, #tpu.memory_space<vmem>>, %arg3: memref<1x64xf32, #tpu.memory_space<vmem>>, %arg4: memref<1x64xf32, #tpu.memory_space<vmem>>, %arg5: memref<64x64xbf16, #tpu.memory_space<vmem>>, %arg6: memref<1x64xf32, #tpu.memory_space<vmem>>, %arg7: memref<64x64xbf16, #tpu.memory_space<vmem>>, %arg8: memref<1x64xf32, #tpu.memory_space<vmem>>, %arg9: memref<64x64xbf16, #tpu.memory_space<vmem>>, %arg10: memref<1x64xf32, #tpu.memory_space<vmem>>, %arg11: memref<64x64xbf16, #tpu.memory_space<vmem>>, %arg12: memref<1x64xf32, #tpu.memory_space<vmem>>, %arg13: memref<1x64xf32, #tpu.memory_space<vmem>>, %arg14: memref<1x64xf32, #tpu.memory_space<vmem>>, %arg15: memref<64x256xbf16, #tpu.memory_space<vmem>>, %arg16: memref<1x256xf32, #tpu.memory_space<vmem>>, %arg17: memref<256x64xbf16, #tpu.memory_space<vmem>>, %arg18: memref<1x64xf32, #tpu.memory_space<vmem>>, %arg19: memref<1x16x64xf32, #tpu.memory_space<vmem>>, %arg20: memref<16x64xbf16, #tpu.memory_space<vmem>>) attributes {dimension_semantics = [#tpu.dimension_semantics<parallel>, #tpu.dimension_semantics<parallel>], iteration_bounds = array<i64: 2, 1>, scalar_prefetch = 0 : i64, scratch_operands = 1 : i64, tpu.core_type = #tpu.core_type<tc>, window_params = [{transform_indices = @transform_0, window_bounds = array<i64: 1, 16, 64>}, {pipeline_mode = #tpu.pipeline_mode<synchronous>, transform_indices = @transform_1, window_bounds = array<i64: 1, 64>}, {pipeline_mode = #tpu.pipeline_mode<synchronous>, transform_indices = @transform_2, window_bounds = array<i64: 1, 64>}, {pipeline_mode = #tpu.pipeline_mode<synchronous>, transform_indices = @transform_3, window_bounds = array<i64: 64, 64>}, {pipeline_mode = #tpu.pipeline_mode<synchronous>, transform_indices = @transform_4, window_bounds = array<i64: 1, 64>}, {pipeline_mode = #tpu.pipeline_mode<synchronous>, transform_indices = @transform_5, window_bounds = array<i64: 64, 64>}, {pipeline_mode = #tpu.pipeline_mode<synchronous>, transform_indices = @transform_6, window_bounds = array<i64: 1, 64>}, {pipeline_mode = #tpu.pipeline_mode<synchronous>, transform_indices = @transform_7, window_bounds = array<i64: 64, 64>}, {pipeline_mode = #tpu.pipeline_mode<synchronous>, transform_indices = @transform_8, window_bounds = array<i64: 1, 64>}, {pipeline_mode = #tpu.pipeline_mode<synchronous>, transform_indices = @transform_9, window_bounds = array<i64: 64, 64>}, {pipeline_mode = #tpu.pipeline_mode<synchronous>, transform_indices = @transform_10, window_bounds = array<i64: 1, 64>}, {pipeline_mode = #tpu.pipeline_mode<synchronous>, transform_indices = @transform_11, window_bounds = array<i64: 1, 64>}, {pipeline_mode = #tpu.pipeline_mode<synchronous>, transform_indices = @transform_12, window_bounds = array<i64: 1, 64>}, {pipeline_mode = #tpu.pipeline_mode<synchronous>, transform_indices = @transform_13, window_bounds = array<i64: 64, 256>}, {pipeline_mode = #tpu.pipeline_mode<synchronous>, transform_indices = @transform_14, window_bounds = array<i64: 1, 256>}, {pipeline_mode = #tpu.pipeline_mode<synchronous>, transform_indices = @transform_15, window_bounds = array<i64: 256, 64>}, {pipeline_mode = #tpu.pipeline_mode<synchronous>, transform_indices = @transform_16, window_bounds = array<i64: 1, 64>}, {transform_indices = @transform_17, window_bounds = array<i64: 1, 16, 64>}]} {
    %c16_i32 = arith.constant 16 : i32
    %0 = arith.muli %arg1, %c16_i32 : i32
    %1 = tpu.assume_multiple %0, 16 : i32
    %c0 = arith.constant 0 : index
    %c0_0 = arith.constant 0 : index
    %c0_1 = arith.constant 0 : index
    %2 = vector.load %arg2[%c0, %c0_0, %c0_1] : memref<1x16x64xf32, #tpu.memory_space<vmem>>, vector<1x16x64xf32>
    %3 = vector.shape_cast %2 : vector<1x16x64xf32> to vector<16x64xf32>
    %c0_2 = arith.constant 0 : index
    %c0_3 = arith.constant 0 : index
    %4 = vector.load %arg3[%c0_2, %c0_3] : memref<1x64xf32, #tpu.memory_space<vmem>>, vector<1x64xf32>
    %5 = vector.shape_cast %4 : vector<1x64xf32> to vector<64xf32>
    %c0_4 = arith.constant 0 : index
    %c0_5 = arith.constant 0 : index
    %6 = vector.load %arg4[%c0_4, %c0_5] : memref<1x64xf32, #tpu.memory_space<vmem>>, vector<1x64xf32>
    %7 = vector.shape_cast %6 : vector<1x64xf32> to vector<64xf32>
    %cst = arith.constant dense<0.000000e+00> : vector<16xf32>
    %8 = vector.multi_reduction <add>, %3, %cst [1] : vector<16x64xf32> to vector<16xf32>
    %9 = vector.shape_cast %8 : vector<16xf32> to vector<16x1xf32>
    %cst_6 = arith.constant 6.400000e+01 : f32
    %10 = vector.broadcast %cst_6 : f32 to vector<16x1xf32>
    %11 = arith.divf %9, %10 : vector<16x1xf32>
    %12 = vector.broadcast %11 : vector<16x1xf32> to vector<16x64xf32>
    %13 = arith.subf %3, %12 : vector<16x64xf32>
    %14 = arith.mulf %13, %13 : vector<16x64xf32>
    %cst_7 = arith.constant dense<0.000000e+00> : vector<16xf32>
    %15 = vector.multi_reduction <add>, %14, %cst_7 [1] : vector<16x64xf32> to vector<16xf32>
    %16 = vector.shape_cast %15 : vector<16xf32> to vector<16x1xf32>
    %cst_8 = arith.constant 6.400000e+01 : f32
    %17 = vector.broadcast %cst_8 : f32 to vector<16x1xf32>
    %18 = arith.divf %16, %17 : vector<16x1xf32>
    %19 = vector.broadcast %11 : vector<16x1xf32> to vector<16x64xf32>
    %20 = arith.subf %3, %19 : vector<16x64xf32>
    %cst_9 = arith.constant 9.99999974E-6 : f32
    %21 = vector.broadcast %cst_9 : f32 to vector<16x1xf32>
    %22 = arith.addf %18, %21 : vector<16x1xf32>
    %23 = math.rsqrt %22 : vector<16x1xf32>
    %24 = vector.broadcast %23 : vector<16x1xf32> to vector<16x64xf32>
    %25 = arith.mulf %20, %24 : vector<16x64xf32>
    %26 = vector.shape_cast %5 : vector<64xf32> to vector<1x64xf32>
    %27 = vector.broadcast %26 : vector<1x64xf32> to vector<16x64xf32>
    %28 = arith.mulf %25, %27 : vector<16x64xf32>
    %29 = vector.shape_cast %7 : vector<64xf32> to vector<1x64xf32>
    %30 = vector.broadcast %29 : vector<1x64xf32> to vector<16x64xf32>
    %31 = arith.addf %28, %30 : vector<16x64xf32>
    %32 = arith.truncf %31 : vector<16x64xf32> to vector<16x64xbf16>
    %c0_10 = arith.constant 0 : index
    %33 = arith.index_cast %1 : i32 to index
    %c0_11 = arith.constant 0 : index
    %34 = vector.load %arg2[%c0_10, %33, %c0_11] : memref<1x16x64xf32, #tpu.memory_space<vmem>>, vector<1x16x64xf32>
    %35 = vector.shape_cast %34 : vector<1x16x64xf32> to vector<16x64xf32>
    %c0_12 = arith.constant 0 : index
    %c0_13 = arith.constant 0 : index
    %36 = vector.load %arg3[%c0_12, %c0_13] : memref<1x64xf32, #tpu.memory_space<vmem>>, vector<1x64xf32>
    %37 = vector.shape_cast %36 : vector<1x64xf32> to vector<64xf32>
    %c0_14 = arith.constant 0 : index
    %c0_15 = arith.constant 0 : index
    %38 = vector.load %arg4[%c0_14, %c0_15] : memref<1x64xf32, #tpu.memory_space<vmem>>, vector<1x64xf32>
    %39 = vector.shape_cast %38 : vector<1x64xf32> to vector<64xf32>
    %cst_16 = arith.constant dense<0.000000e+00> : vector<16xf32>
    %40 = vector.multi_reduction <add>, %35, %cst_16 [1] : vector<16x64xf32> to vector<16xf32>
    %41 = vector.shape_cast %40 : vector<16xf32> to vector<16x1xf32>
    %cst_17 = arith.constant 6.400000e+01 : f32
    %42 = vector.broadcast %cst_17 : f32 to vector<16x1xf32>
    %43 = arith.divf %41, %42 : vector<16x1xf32>
    %44 = vector.broadcast %43 : vector<16x1xf32> to vector<16x64xf32>
    %45 = arith.subf %35, %44 : vector<16x64xf32>
    %46 = arith.mulf %45, %45 : vector<16x64xf32>
    %cst_18 = arith.constant dense<0.000000e+00> : vector<16xf32>
    %47 = vector.multi_reduction <add>, %46, %cst_18 [1] : vector<16x64xf32> to vector<16xf32>
    %48 = vector.shape_cast %47 : vector<16xf32> to vector<16x1xf32>
    %cst_19 = arith.constant 6.400000e+01 : f32
    %49 = vector.broadcast %cst_19 : f32 to vector<16x1xf32>
    %50 = arith.divf %48, %49 : vector<16x1xf32>
    %51 = vector.broadcast %43 : vector<16x1xf32> to vector<16x64xf32>
    %52 = arith.subf %35, %51 : vector<16x64xf32>
    %cst_20 = arith.constant 9.99999974E-6 : f32
    %53 = vector.broadcast %cst_20 : f32 to vector<16x1xf32>
    %54 = arith.addf %50, %53 : vector<16x1xf32>
    %55 = math.rsqrt %54 : vector<16x1xf32>
    %56 = vector.broadcast %55 : vector<16x1xf32> to vector<16x64xf32>
    %57 = arith.mulf %52, %56 : vector<16x64xf32>
    %58 = vector.shape_cast %37 : vector<64xf32> to vector<1x64xf32>
    %59 = vector.broadcast %58 : vector<1x64xf32> to vector<16x64xf32>
    %60 = arith.mulf %57, %59 : vector<16x64xf32>
    %61 = vector.shape_cast %39 : vector<64xf32> to vector<1x64xf32>
    %62 = vector.broadcast %61 : vector<1x64xf32> to vector<16x64xf32>
    %63 = arith.addf %60, %62 : vector<16x64xf32>
    %64 = arith.truncf %63 : vector<16x64xf32> to vector<16x64xbf16>
    %c0_21 = arith.constant 0 : index
    %c0_22 = arith.constant 0 : index
    %65 = vector.load %arg5[%c0_21, %c0_22] : memref<64x64xbf16, #tpu.memory_space<vmem>>, vector<64x64xbf16>
    %cst_23 = arith.constant dense<0.000000e+00> : vector<16x64xf32>
    %66 = tpu.matmul %64, %65, %cst_23 {dimension_numbers = #tpu.dot_dimension_numbers<[1], [0], [0], [1], [0, 0, 1, 1], [], []>} : vector<16x64xbf16>, vector<64x64xbf16>, vector<16x64xf32> -> vector<16x64xf32>
    %c0_24 = arith.constant 0 : index
    %c0_25 = arith.constant 0 : index
    %67 = vector.load %arg6[%c0_24, %c0_25] : memref<1x64xf32, #tpu.memory_space<vmem>>, vector<1x64xf32>
    %68 = vector.shape_cast %67 : vector<1x64xf32> to vector<64xf32>
    %69 = vector.shape_cast %68 : vector<64xf32> to vector<1x64xf32>
    %70 = vector.broadcast %69 : vector<1x64xf32> to vector<16x64xf32>
    %71 = arith.addf %66, %70 : vector<16x64xf32>
    %cst_26 = arith.constant 2.500000e-01 : f32
    %72 = vector.broadcast %cst_26 : f32 to vector<16x64xf32>
    %73 = arith.mulf %71, %72 : vector<16x64xf32>
    %74 = arith.truncf %73 : vector<16x64xf32> to vector<16x64xbf16>
    %c0_27 = arith.constant 0 : index
    %c0_28 = arith.constant 0 : index
    %75 = vector.load %arg7[%c0_27, %c0_28] : memref<64x64xbf16, #tpu.memory_space<vmem>>, vector<64x64xbf16>
    %cst_29 = arith.constant dense<0.000000e+00> : vector<16x64xf32>
    %76 = tpu.matmul %32, %75, %cst_29 {dimension_numbers = #tpu.dot_dimension_numbers<[1], [0], [0], [1], [0, 0, 1, 1], [], []>} : vector<16x64xbf16>, vector<64x64xbf16>, vector<16x64xf32> -> vector<16x64xf32>
    %c0_30 = arith.constant 0 : index
    %c0_31 = arith.constant 0 : index
    %77 = vector.load %arg8[%c0_30, %c0_31] : memref<1x64xf32, #tpu.memory_space<vmem>>, vector<1x64xf32>
    %78 = vector.shape_cast %77 : vector<1x64xf32> to vector<64xf32>
    %79 = vector.shape_cast %78 : vector<64xf32> to vector<1x64xf32>
    %80 = vector.broadcast %79 : vector<1x64xf32> to vector<16x64xf32>
    %81 = arith.addf %76, %80 : vector<16x64xf32>
    %82 = arith.truncf %81 : vector<16x64xf32> to vector<16x64xbf16>
    %c0_32 = arith.constant 0 : index
    %c0_33 = arith.constant 0 : index
    %83 = vector.load %arg9[%c0_32, %c0_33] : memref<64x64xbf16, #tpu.memory_space<vmem>>, vector<64x64xbf16>
    %cst_34 = arith.constant dense<0.000000e+00> : vector<16x64xf32>
    %84 = tpu.matmul %32, %83, %cst_34 {dimension_numbers = #tpu.dot_dimension_numbers<[1], [0], [0], [1], [0, 0, 1, 1], [], []>} : vector<16x64xbf16>, vector<64x64xbf16>, vector<16x64xf32> -> vector<16x64xf32>
    %c0_35 = arith.constant 0 : index
    %c0_36 = arith.constant 0 : index
    %85 = vector.load %arg10[%c0_35, %c0_36] : memref<1x64xf32, #tpu.memory_space<vmem>>, vector<1x64xf32>
    %86 = vector.shape_cast %85 : vector<1x64xf32> to vector<64xf32>
    %87 = vector.shape_cast %86 : vector<64xf32> to vector<1x64xf32>
    %88 = vector.broadcast %87 : vector<1x64xf32> to vector<16x64xf32>
    %89 = arith.addf %84, %88 : vector<16x64xf32>
    %90 = arith.truncf %89 : vector<16x64xf32> to vector<16x64xbf16>
    %91 = vector.extract_strided_slice %74 {offsets = [0, 0], sizes = [16, 16], strides = [1, 1]} : vector<16x64xbf16> to vector<16x16xbf16>
    %92 = vector.extract_strided_slice %82 {offsets = [0, 0], sizes = [16, 16], strides = [1, 1]} : vector<16x64xbf16> to vector<16x16xbf16>
    %cst_37 = arith.constant dense<0.000000e+00> : vector<16x16xf32>
    %93 = tpu.matmul %91, %92, %cst_37 {dimension_numbers = #tpu.dot_dimension_numbers<[1], [1], [0], [0], [0, 0, 1, 0], [], []>} : vector<16x16xbf16>, vector<16x16xbf16>, vector<16x16xf32> -> vector<16x16xf32>
    %cst_38 = arith.constant dense<0xFF800000> : vector<16xf32>
    %94 = vector.multi_reduction <maximumf>, %93, %cst_38 [1] : vector<16x16xf32> to vector<16xf32>
    %95 = vector.shape_cast %94 : vector<16xf32> to vector<16x1xf32>
    %96 = vector.broadcast %95 : vector<16x1xf32> to vector<16x16xf32>
    %97 = arith.subf %93, %96 : vector<16x16xf32>
    %98 = math.exp %97 : vector<16x16xf32>
    %cst_39 = arith.constant dense<0.000000e+00> : vector<16xf32>
    %99 = vector.multi_reduction <add>, %98, %cst_39 [1] : vector<16x16xf32> to vector<16xf32>
    %100 = vector.shape_cast %99 : vector<16xf32> to vector<16x1xf32>
    %101 = tpu.reciprocal %100 {approx = true} : vector<16x1xf32> -> vector<16x1xf32>
    %102 = vector.broadcast %101 : vector<16x1xf32> to vector<16x16xf32>
    %103 = arith.mulf %98, %102 : vector<16x16xf32>
    %104 = arith.truncf %103 : vector<16x16xf32> to vector<16x16xbf16>
    %105 = vector.extract_strided_slice %90 {offsets = [0, 0], sizes = [16, 16], strides = [1, 1]} : vector<16x64xbf16> to vector<16x16xbf16>
    %cst_40 = arith.constant dense<0.000000e+00> : vector<16x16xf32>
    %106 = tpu.matmul %104, %105, %cst_40 {dimension_numbers = #tpu.dot_dimension_numbers<[1], [0], [0], [1], [0, 0, 1, 1], [], []>} : vector<16x16xbf16>, vector<16x16xbf16>, vector<16x16xf32> -> vector<16x16xf32>
    %107 = arith.truncf %106 : vector<16x16xf32> to vector<16x16xbf16>
    %c0_41 = arith.constant 0 : index
    %c0_42 = arith.constant 0 : index
    %108 = vector.load %arg20[%c0_41, %c0_42] : memref<16x64xbf16, #tpu.memory_space<vmem>>, vector<16x16xbf16>
    tpu.vector_store %arg20[%c0_41, %c0_42], %107 {strides = array<i32>} : memref<16x64xbf16, #tpu.memory_space<vmem>>, vector<16x16xbf16>,
    %109 = vector.extract_strided_slice %74 {offsets = [0, 16], sizes = [16, 16], strides = [1, 1]} : vector<16x64xbf16> to vector<16x16xbf16>
    %110 = vector.extract_strided_slice %82 {offsets = [0, 16], sizes = [16, 16], strides = [1, 1]} : vector<16x64xbf16> to vector<16x16xbf16>
    %cst_43 = arith.constant dense<0.000000e+00> : vector<16x16xf32>
    %111 = tpu.matmul %109, %110, %cst_43 {dimension_numbers = #tpu.dot_dimension_numbers<[1], [1], [0], [0], [0, 0, 1, 0], [], []>} : vector<16x16xbf16>, vector<16x16xbf16>, vector<16x16xf32> -> vector<16x16xf32>
    %cst_44 = arith.constant dense<0xFF800000> : vector<16xf32>
    %112 = vector.multi_reduction <maximumf>, %111, %cst_44 [1] : vector<16x16xf32> to vector<16xf32>
    %113 = vector.shape_cast %112 : vector<16xf32> to vector<16x1xf32>
    %114 = vector.broadcast %113 : vector<16x1xf32> to vector<16x16xf32>
    %115 = arith.subf %111, %114 : vector<16x16xf32>
    %116 = math.exp %115 : vector<16x16xf32>
    %cst_45 = arith.constant dense<0.000000e+00> : vector<16xf32>
    %117 = vector.multi_reduction <add>, %116, %cst_45 [1] : vector<16x16xf32> to vector<16xf32>
    %118 = vector.shape_cast %117 : vector<16xf32> to vector<16x1xf32>
    %119 = tpu.reciprocal %118 {approx = true} : vector<16x1xf32> -> vector<16x1xf32>
    %120 = vector.broadcast %119 : vector<16x1xf32> to vector<16x16xf32>
    %121 = arith.mulf %116, %120 : vector<16x16xf32>
    %122 = arith.truncf %121 : vector<16x16xf32> to vector<16x16xbf16>
    %123 = vector.extract_strided_slice %90 {offsets = [0, 16], sizes = [16, 16], strides = [1, 1]} : vector<16x64xbf16> to vector<16x16xbf16>
    %cst_46 = arith.constant dense<0.000000e+00> : vector<16x16xf32>
    %124 = tpu.matmul %122, %123, %cst_46 {dimension_numbers = #tpu.dot_dimension_numbers<[1], [0], [0], [1], [0, 0, 1, 1], [], []>} : vector<16x16xbf16>, vector<16x16xbf16>, vector<16x16xf32> -> vector<16x16xf32>
    %125 = arith.truncf %124 : vector<16x16xf32> to vector<16x16xbf16>
    %c0_47 = arith.constant 0 : index
    %c16 = arith.constant 16 : index
    %126 = vector.load %arg20[%c0_47, %c16] : memref<16x64xbf16, #tpu.memory_space<vmem>>, vector<16x16xbf16>
    tpu.vector_store %arg20[%c0_47, %c16], %125 {strides = array<i32>} : memref<16x64xbf16, #tpu.memory_space<vmem>>, vector<16x16xbf16>,
    %127 = vector.extract_strided_slice %74 {offsets = [0, 32], sizes = [16, 16], strides = [1, 1]} : vector<16x64xbf16> to vector<16x16xbf16>
    %128 = vector.extract_strided_slice %82 {offsets = [0, 32], sizes = [16, 16], strides = [1, 1]} : vector<16x64xbf16> to vector<16x16xbf16>
    %cst_48 = arith.constant dense<0.000000e+00> : vector<16x16xf32>
    %129 = tpu.matmul %127, %128, %cst_48 {dimension_numbers = #tpu.dot_dimension_numbers<[1], [1], [0], [0], [0, 0, 1, 0], [], []>} : vector<16x16xbf16>, vector<16x16xbf16>, vector<16x16xf32> -> vector<16x16xf32>
    %cst_49 = arith.constant dense<0xFF800000> : vector<16xf32>
    %130 = vector.multi_reduction <maximumf>, %129, %cst_49 [1] : vector<16x16xf32> to vector<16xf32>
    %131 = vector.shape_cast %130 : vector<16xf32> to vector<16x1xf32>
    %132 = vector.broadcast %131 : vector<16x1xf32> to vector<16x16xf32>
    %133 = arith.subf %129, %132 : vector<16x16xf32>
    %134 = math.exp %133 : vector<16x16xf32>
    %cst_50 = arith.constant dense<0.000000e+00> : vector<16xf32>
    %135 = vector.multi_reduction <add>, %134, %cst_50 [1] : vector<16x16xf32> to vector<16xf32>
    %136 = vector.shape_cast %135 : vector<16xf32> to vector<16x1xf32>
    %137 = tpu.reciprocal %136 {approx = true} : vector<16x1xf32> -> vector<16x1xf32>
    %138 = vector.broadcast %137 : vector<16x1xf32> to vector<16x16xf32>
    %139 = arith.mulf %134, %138 : vector<16x16xf32>
    %140 = arith.truncf %139 : vector<16x16xf32> to vector<16x16xbf16>
    %141 = vector.extract_strided_slice %90 {offsets = [0, 32], sizes = [16, 16], strides = [1, 1]} : vector<16x64xbf16> to vector<16x16xbf16>
    %cst_51 = arith.constant dense<0.000000e+00> : vector<16x16xf32>
    %142 = tpu.matmul %140, %141, %cst_51 {dimension_numbers = #tpu.dot_dimension_numbers<[1], [0], [0], [1], [0, 0, 1, 1], [], []>} : vector<16x16xbf16>, vector<16x16xbf16>, vector<16x16xf32> -> vector<16x16xf32>
    %143 = arith.truncf %142 : vector<16x16xf32> to vector<16x16xbf16>
    %c0_52 = arith.constant 0 : index
    %c32 = arith.constant 32 : index
    %144 = vector.load %arg20[%c0_52, %c32] : memref<16x64xbf16, #tpu.memory_space<vmem>>, vector<16x16xbf16>
    tpu.vector_store %arg20[%c0_52, %c32], %143 {strides = array<i32>} : memref<16x64xbf16, #tpu.memory_space<vmem>>, vector<16x16xbf16>,
    %145 = vector.extract_strided_slice %74 {offsets = [0, 48], sizes = [16, 16], strides = [1, 1]} : vector<16x64xbf16> to vector<16x16xbf16>
    %146 = vector.extract_strided_slice %82 {offsets = [0, 48], sizes = [16, 16], strides = [1, 1]} : vector<16x64xbf16> to vector<16x16xbf16>
    %cst_53 = arith.constant dense<0.000000e+00> : vector<16x16xf32>
    %147 = tpu.matmul %145, %146, %cst_53 {dimension_numbers = #tpu.dot_dimension_numbers<[1], [1], [0], [0], [0, 0, 1, 0], [], []>} : vector<16x16xbf16>, vector<16x16xbf16>, vector<16x16xf32> -> vector<16x16xf32>
    %cst_54 = arith.constant dense<0xFF800000> : vector<16xf32>
    %148 = vector.multi_reduction <maximumf>, %147, %cst_54 [1] : vector<16x16xf32> to vector<16xf32>
    %149 = vector.shape_cast %148 : vector<16xf32> to vector<16x1xf32>
    %150 = vector.broadcast %149 : vector<16x1xf32> to vector<16x16xf32>
    %151 = arith.subf %147, %150 : vector<16x16xf32>
    %152 = math.exp %151 : vector<16x16xf32>
    %cst_55 = arith.constant dense<0.000000e+00> : vector<16xf32>
    %153 = vector.multi_reduction <add>, %152, %cst_55 [1] : vector<16x16xf32> to vector<16xf32>
    %154 = vector.shape_cast %153 : vector<16xf32> to vector<16x1xf32>
    %155 = tpu.reciprocal %154 {approx = true} : vector<16x1xf32> -> vector<16x1xf32>
    %156 = vector.broadcast %155 : vector<16x1xf32> to vector<16x16xf32>
    %157 = arith.mulf %152, %156 : vector<16x16xf32>
    %158 = arith.truncf %157 : vector<16x16xf32> to vector<16x16xbf16>
    %159 = vector.extract_strided_slice %90 {offsets = [0, 48], sizes = [16, 16], strides = [1, 1]} : vector<16x64xbf16> to vector<16x16xbf16>
    %cst_56 = arith.constant dense<0.000000e+00> : vector<16x16xf32>
    %160 = tpu.matmul %158, %159, %cst_56 {dimension_numbers = #tpu.dot_dimension_numbers<[1], [0], [0], [1], [0, 0, 1, 1], [], []>} : vector<16x16xbf16>, vector<16x16xbf16>, vector<16x16xf32> -> vector<16x16xf32>
    %161 = arith.truncf %160 : vector<16x16xf32> to vector<16x16xbf16>
    %c0_57 = arith.constant 0 : index
    %c48 = arith.constant 48 : index
    %162 = vector.load %arg20[%c0_57, %c48] : memref<16x64xbf16, #tpu.memory_space<vmem>>, vector<16x16xbf16>
    tpu.vector_store %arg20[%c0_57, %c48], %161 {strides = array<i32>} : memref<16x64xbf16, #tpu.memory_space<vmem>>, vector<16x16xbf16>,
    %c0_58 = arith.constant 0 : index
    %c0_59 = arith.constant 0 : index
    %163 = vector.load %arg20[%c0_58, %c0_59] : memref<16x64xbf16, #tpu.memory_space<vmem>>, vector<16x64xbf16>
    %c0_60 = arith.constant 0 : index
    %c0_61 = arith.constant 0 : index
    %164 = vector.load %arg11[%c0_60, %c0_61] : memref<64x64xbf16, #tpu.memory_space<vmem>>, vector<64x64xbf16>
    %cst_62 = arith.constant dense<0.000000e+00> : vector<16x64xf32>
    %165 = tpu.matmul %163, %164, %cst_62 {dimension_numbers = #tpu.dot_dimension_numbers<[1], [0], [0], [1], [0, 0, 1, 1], [], []>} : vector<16x64xbf16>, vector<64x64xbf16>, vector<16x64xf32> -> vector<16x64xf32>
    %c0_63 = arith.constant 0 : index
    %c0_64 = arith.constant 0 : index
    %166 = vector.load %arg12[%c0_63, %c0_64] : memref<1x64xf32, #tpu.memory_space<vmem>>, vector<1x64xf32>
    %167 = vector.shape_cast %166 : vector<1x64xf32> to vector<64xf32>
    %168 = vector.shape_cast %167 : vector<64xf32> to vector<1x64xf32>
    %169 = vector.broadcast %168 : vector<1x64xf32> to vector<16x64xf32>
    %170 = arith.addf %165, %169 : vector<16x64xf32>
    %171 = arith.addf %170, %35 : vector<16x64xf32>
    %c0_65 = arith.constant 0 : index
    %c0_66 = arith.constant 0 : index
    %172 = vector.load %arg13[%c0_65, %c0_66] : memref<1x64xf32, #tpu.memory_space<vmem>>, vector<1x64xf32>
    %173 = vector.shape_cast %172 : vector<1x64xf32> to vector<64xf32>
    %c0_67 = arith.constant 0 : index
    %c0_68 = arith.constant 0 : index
    %174 = vector.load %arg14[%c0_67, %c0_68] : memref<1x64xf32, #tpu.memory_space<vmem>>, vector<1x64xf32>
    %175 = vector.shape_cast %174 : vector<1x64xf32> to vector<64xf32>
    %cst_69 = arith.constant dense<0.000000e+00> : vector<16xf32>
    %176 = vector.multi_reduction <add>, %171, %cst_69 [1] : vector<16x64xf32> to vector<16xf32>
    %177 = vector.shape_cast %176 : vector<16xf32> to vector<16x1xf32>
    %cst_70 = arith.constant 6.400000e+01 : f32
    %178 = vector.broadcast %cst_70 : f32 to vector<16x1xf32>
    %179 = arith.divf %177, %178 : vector<16x1xf32>
    %180 = vector.broadcast %179 : vector<16x1xf32> to vector<16x64xf32>
    %181 = arith.subf %171, %180 : vector<16x64xf32>
    %182 = arith.mulf %181, %181 : vector<16x64xf32>
    %cst_71 = arith.constant dense<0.000000e+00> : vector<16xf32>
    %183 = vector.multi_reduction <add>, %182, %cst_71 [1] : vector<16x64xf32> to vector<16xf32>
    %184 = vector.shape_cast %183 : vector<16xf32> to vector<16x1xf32>
    %cst_72 = arith.constant 6.400000e+01 : f32
    %185 = vector.broadcast %cst_72 : f32 to vector<16x1xf32>
    %186 = arith.divf %184, %185 : vector<16x1xf32>
    %187 = vector.broadcast %179 : vector<16x1xf32> to vector<16x64xf32>
    %188 = arith.subf %171, %187 : vector<16x64xf32>
    %cst_73 = arith.constant 9.99999974E-6 : f32
    %189 = vector.broadcast %cst_73 : f32 to vector<16x1xf32>
    %190 = arith.addf %186, %189 : vector<16x1xf32>
    %191 = math.rsqrt %190 : vector<16x1xf32>
    %192 = vector.broadcast %191 : vector<16x1xf32> to vector<16x64xf32>
    %193 = arith.mulf %188, %192 : vector<16x64xf32>
    %194 = vector.shape_cast %173 : vector<64xf32> to vector<1x64xf32>
    %195 = vector.broadcast %194 : vector<1x64xf32> to vector<16x64xf32>
    %196 = arith.mulf %193, %195 : vector<16x64xf32>
    %197 = vector.shape_cast %175 : vector<64xf32> to vector<1x64xf32>
    %198 = vector.broadcast %197 : vector<1x64xf32> to vector<16x64xf32>
    %199 = arith.addf %196, %198 : vector<16x64xf32>
    %200 = arith.truncf %199 : vector<16x64xf32> to vector<16x64xbf16>
    %cst_74 = arith.constant 0.000000e+00 : f32
    %201 = vector.broadcast %cst_74 : f32 to vector<16x64xf32>
    %c0_75 = arith.constant 0 : index
    %c0_76 = arith.constant 0 : index
    %202 = vector.load %arg15[%c0_75, %c0_76] : memref<64x256xbf16, #tpu.memory_space<vmem>>, vector<64x256xbf16>
    %cst_77 = arith.constant dense<0.000000e+00> : vector<16x256xf32>
    %203 = tpu.matmul %200, %202, %cst_77 {dimension_numbers = #tpu.dot_dimension_numbers<[1], [0], [0], [1], [0, 0, 1, 1], [], []>} : vector<16x64xbf16>, vector<64x256xbf16>, vector<16x256xf32> -> vector<16x256xf32>
    %c0_78 = arith.constant 0 : index
    %c0_79 = arith.constant 0 : index
    %204 = vector.load %arg16[%c0_78, %c0_79] : memref<1x256xf32, #tpu.memory_space<vmem>>, vector<1x256xf32>
    %205 = vector.shape_cast %204 : vector<1x256xf32> to vector<256xf32>
    %206 = vector.shape_cast %205 : vector<256xf32> to vector<1x256xf32>
    %207 = vector.broadcast %206 : vector<1x256xf32> to vector<16x256xf32>
    %208 = arith.addf %203, %207 : vector<16x256xf32>
    %cst_80 = arith.constant 5.000000e-01 : f32
    %209 = vector.broadcast %cst_80 : f32 to vector<16x256xf32>
    %210 = arith.mulf %209, %208 : vector<16x256xf32>
    %cst_81 = arith.constant 0.707106769 : f32
    %211 = vector.broadcast %cst_81 : f32 to vector<16x256xf32>
    %212 = arith.mulf %208, %211 : vector<16x256xf32>
    %213 = math.erf %212 : vector<16x256xf32>
    %cst_82 = arith.constant 1.000000e+00 : f32
    %214 = vector.broadcast %cst_82 : f32 to vector<16x256xf32>
    %215 = arith.addf %214, %213 : vector<16x256xf32>
    %216 = arith.mulf %210, %215 : vector<16x256xf32>
    %217 = arith.truncf %216 : vector<16x256xf32> to vector<16x256xbf16>
    %c0_83 = arith.constant 0 : index
    %c0_84 = arith.constant 0 : index
    %218 = vector.load %arg17[%c0_83, %c0_84] : memref<256x64xbf16, #tpu.memory_space<vmem>>, vector<256x64xbf16>
    %cst_85 = arith.constant dense<0.000000e+00> : vector<16x64xf32>
    %219 = tpu.matmul %217, %218, %cst_85 {dimension_numbers = #tpu.dot_dimension_numbers<[1], [0], [0], [1], [0, 0, 1, 1], [], []>} : vector<16x256xbf16>, vector<256x64xbf16>, vector<16x64xf32> -> vector<16x64xf32>
    %220 = arith.addf %201, %219 : vector<16x64xf32>
    %c0_86 = arith.constant 0 : index
    %c0_87 = arith.constant 0 : index
    %221 = vector.load %arg18[%c0_86, %c0_87] : memref<1x64xf32, #tpu.memory_space<vmem>>, vector<1x64xf32>
    %222 = vector.shape_cast %221 : vector<1x64xf32> to vector<64xf32>
    %223 = vector.shape_cast %222 : vector<64xf32> to vector<1x64xf32>
    %224 = vector.broadcast %223 : vector<1x64xf32> to vector<16x64xf32>
    %225 = arith.addf %220, %224 : vector<16x64xf32>
    %226 = arith.addf %225, %171 : vector<16x64xf32>
    %c0_88 = arith.constant 0 : index
    %c0_89 = arith.constant 0 : index
    %c0_90 = arith.constant 0 : index
    %227 = vector.load %arg19[%c0_88, %c0_89, %c0_90] : memref<1x16x64xf32, #tpu.memory_space<vmem>>, vector<1x16x64xf32>
    %228 = vector.shape_cast %227 : vector<1x16x64xf32> to vector<16x64xf32>
    %229 = vector.shape_cast %226 : vector<16x64xf32> to vector<1x16x64xf32>
    tpu.vector_store %arg19[%c0_88, %c0_89, %c0_90], %229 {strides = array<i32>} : memref<1x16x64xf32, #tpu.memory_space<vmem>>, vector<1x16x64xf32>,
    return
  }
  func.func @transform_0(%arg0: i32, %arg1: i32) -> (i32, i32, i32) {
    %c0_i32 = arith.constant 0 : i32
    %c0_i32_0 = arith.constant 0 : i32
    %c0_i32_1 = arith.constant 0 : i32
    return %arg0, %c0_i32, %c0_i32_0 : i32, i32, i32
  }
  func.func @transform_1(%arg0: i32, %arg1: i32) -> (i32, i32) {
    %c0_i32 = arith.constant 0 : i32
    %c0_i32_0 = arith.constant 0 : i32
    %c0_i32_1 = arith.constant 0 : i32
    return %c0_i32, %c0_i32_0 : i32, i32
  }
  func.func @transform_2(%arg0: i32, %arg1: i32) -> (i32, i32) {
    %c0_i32 = arith.constant 0 : i32
    %c0_i32_0 = arith.constant 0 : i32
    %c0_i32_1 = arith.constant 0 : i32
    return %c0_i32, %c0_i32_0 : i32, i32
  }
  func.func @transform_3(%arg0: i32, %arg1: i32) -> (i32, i32) {
    %c0_i32 = arith.constant 0 : i32
    %c0_i32_0 = arith.constant 0 : i32
    %c0_i32_1 = arith.constant 0 : i32
    return %c0_i32, %c0_i32_0 : i32, i32
  }
  func.func @transform_4(%arg0: i32, %arg1: i32) -> (i32, i32) {
    %c0_i32 = arith.constant 0 : i32
    %c0_i32_0 = arith.constant 0 : i32
    %c0_i32_1 = arith.constant 0 : i32
    return %c0_i32, %c0_i32_0 : i32, i32
  }
  func.func @transform_5(%arg0: i32, %arg1: i32) -> (i32, i32) {
    %c0_i32 = arith.constant 0 : i32
    %c0_i32_0 = arith.constant 0 : i32
    %c0_i32_1 = arith.constant 0 : i32
    return %c0_i32, %c0_i32_0 : i32, i32
  }
  func.func @transform_6(%arg0: i32, %arg1: i32) -> (i32, i32) {
    %c0_i32 = arith.constant 0 : i32
    %c0_i32_0 = arith.constant 0 : i32
    %c0_i32_1 = arith.constant 0 : i32
    return %c0_i32, %c0_i32_0 : i32, i32
  }
  func.func @transform_7(%arg0: i32, %arg1: i32) -> (i32, i32) {
    %c0_i32 = arith.constant 0 : i32
    %c0_i32_0 = arith.constant 0 : i32
    %c0_i32_1 = arith.constant 0 : i32
    return %c0_i32, %c0_i32_0 : i32, i32
  }
  func.func @transform_8(%arg0: i32, %arg1: i32) -> (i32, i32) {
    %c0_i32 = arith.constant 0 : i32
    %c0_i32_0 = arith.constant 0 : i32
    %c0_i32_1 = arith.constant 0 : i32
    return %c0_i32, %c0_i32_0 : i32, i32
  }
  func.func @transform_9(%arg0: i32, %arg1: i32) -> (i32, i32) {
    %c0_i32 = arith.constant 0 : i32
    %c0_i32_0 = arith.constant 0 : i32
    %c0_i32_1 = arith.constant 0 : i32
    return %c0_i32, %c0_i32_0 : i32, i32
  }
  func.func @transform_10(%arg0: i32, %arg1: i32) -> (i32, i32) {
    %c0_i32 = arith.constant 0 : i32
    %c0_i32_0 = arith.constant 0 : i32
    %c0_i32_1 = arith.constant 0 : i32
    return %c0_i32, %c0_i32_0 : i32, i32
  }
  func.func @transform_11(%arg0: i32, %arg1: i32) -> (i32, i32) {
    %c0_i32 = arith.constant 0 : i32
    %c0_i32_0 = arith.constant 0 : i32
    %c0_i32_1 = arith.constant 0 : i32
    return %c0_i32, %c0_i32_0 : i32, i32
  }
  func.func @transform_12(%arg0: i32, %arg1: i32) -> (i32, i32) {
    %c0_i32 = arith.constant 0 : i32
    %c0_i32_0 = arith.constant 0 : i32
    %c0_i32_1 = arith.constant 0 : i32
    return %c0_i32, %c0_i32_0 : i32, i32
  }
  func.func @transform_13(%arg0: i32, %arg1: i32) -> (i32, i32) {
    %c0_i32 = arith.constant 0 : i32
    %c0_i32_0 = arith.constant 0 : i32
    %c0_i32_1 = arith.constant 0 : i32
    return %c0_i32, %c0_i32_0 : i32, i32
  }
  func.func @transform_14(%arg0: i32, %arg1: i32) -> (i32, i32) {
    %c0_i32 = arith.constant 0 : i32
    %c0_i32_0 = arith.constant 0 : i32
    %c0_i32_1 = arith.constant 0 : i32
    return %c0_i32, %c0_i32_0 : i32, i32
  }
  func.func @transform_15(%arg0: i32, %arg1: i32) -> (i32, i32) {
    %c0_i32 = arith.constant 0 : i32
    %c0_i32_0 = arith.constant 0 : i32
    %c0_i32_1 = arith.constant 0 : i32
    return %c0_i32, %c0_i32_0 : i32, i32
  }
  func.func @transform_16(%arg0: i32, %arg1: i32) -> (i32, i32) {
    %c0_i32 = arith.constant 0 : i32
    %c0_i32_0 = arith.constant 0 : i32
    %c0_i32_1 = arith.constant 0 : i32
    return %c0_i32, %c0_i32_0 : i32, i32
  }
  func.func @transform_17(%arg0: i32, %arg1: i32) -> (i32, i32, i32) {
    %c0_i32 = arith.constant 0 : i32
    %c0_i32_0 = arith.constant 0 : i32
    return %arg0, %arg1, %c0_i32 : i32, i32, i32
  }
}

</mosaic_0001>

<bundles_post_ra>
// kernel: tpu_custom_call.1
= control target key start
LH: loop header
LB: loop body
LE: loop exit
PB: predicated region body
PF: predicated region fallthrough
CT: control target
= control target key end

     0   :  { %s4356_s0 = inlined_call_operand.hbm [shape: f32[2,16,64], index: 0, kind: input, shape index: {}]   ;;  %s4357_s1 = inlined_call_operand.hbm [shape: f32[1,64], index: 1, kind: input, shape index: {}]   ;;  %s4358_s2 = inlined_call_operand.hbm [shape: f32[1,64], index: 2, kind: input, shape index: {}]   ;;  %s4359_s3 = inlined_call_operand.hbm [shape: bf16[64,64], index: 3, kind: input, shape index: {}]   ;;  %s4360_s4 = inlined_call_operand.hbm [shape: f32[1,64], index: 4, kind: input, shape index: {}]   ;;  %s4361_s5 = inlined_call_operand.hbm [shape: bf16[64,64], index: 5, kind: input, shape index: {}]   ;;  %s4362_s6 = inlined_call_operand.hbm [shape: f32[1,64], index: 6, kind: input, shape index: {}]   ;;  %s4363_s7 = inlined_call_operand.hbm [shape: bf16[64,64], index: 7, kind: input, shape index: {}]   ;;  %s4364_s8 = inlined_call_operand.hbm [shape: f32[1,64], index: 8, kind: input, shape index: {}]   ;;  %s4365_s9 = inlined_call_operand.hbm [shape: bf16[64,64], index: 9, kind: input, shape index: {}]   ;;  %s4366_s10 = inlined_call_operand.hbm [shape: f32[1,64], index: 10, kind: input, shape index: {}]   ;;  %s4367_s11 = inlined_call_operand.hbm [shape: f32[1,64], index: 11, kind: input, shape index: {}]   ;;  %s4368_s12 = inlined_call_operand.hbm [shape: f32[1,64], index: 12, kind: input, shape index: {}]   ;;  %s4369_s13 = inlined_call_operand.hbm [shape: bf16[64,256], index: 13, kind: input, shape index: {}]   ;;  %s4370_s14 = inlined_call_operand.hbm [shape: f32[1,256], index: 14, kind: input, shape index: {}]   ;;  %s4371_s15 = inlined_call_operand.hbm [shape: bf16[256,64], index: 15, kind: input, shape index: {}]   ;;  %s4372_s16 = inlined_call_operand.hbm [shape: f32[1,64], index: 16, kind: input, shape index: {}]   ;;  %s4373_s17 = inlined_call_operand.hbm [shape: f32[2,16,64], index: 17, kind: output, shape index: {}]  }
   0x1   :  { %4396 = sst [smem:[#allocation49_spill]] %s4356_s0 }
   0x2   :  { %4397 = sst [smem:[#allocation50_spill]] %s4357_s1 }
   0x3   :  { %4398 = sst [smem:[#allocation51_spill]] %s4358_s2 }
   0x4   :  { %4399 = sst [smem:[#allocation52_spill]] %s4359_s3 }
   0x5   :  { %4400 = sst [smem:[#allocation53_spill]] %s4360_s4 }
   0x6   :  { %4401 = sst [smem:[#allocation54_spill]] %s4361_s5 }
   0x7   :  { %4402 = sst [smem:[#allocation55_spill]] %s4373_s17 }
   0x8   :  { %22 = vsyncpa [#allocation4], 0 }
   0x9   :  { %24 = vsyncpa [#allocation4 + $0x1], 0 }
   0xa   :  { %25 = vsyncpa [#allocation7], 0 }
   0xb   :  { %26 = vsyncpa [#allocation10], 0 }
   0xc   :  { %27 = vsyncpa [#allocation13], 0 }
   0xd   :  { %28 = vsyncpa [#allocation16], 0 }
   0xe   :  { %29 = vsyncpa [#allocation19], 0 }
   0xf   :  { %30 = vsyncpa [#allocation22], 0 }
  0x10   :  { %31 = vsyncpa [#allocation25], 0 }
  0x11   :  { %32 = vsyncpa [#allocation28], 0 }
  0x12   :  { %33 = vsyncpa [#allocation5], 0 }
  0x13   :  { %35 = vsyncpa [#allocation5 + $0x1], 0  ;;  %s3643_s24 = smov 0   ;;  %s3645_s25 = smov 0  }
  0x14   :  { %s3647_s26 = smov 0   ;;  %s3649_s27 = smov 0  }
  0x15   :  { %s3651_s28 = smov 0   ;;  %s3653_s29 = smov 0  }
  0x16 LB: > { %4403 = sst [smem:[#allocation41_spill]] %s3498_s24  ;;  %s4376_s0 = sadd.s32 4294967295, %s3518_s29   ;;  %s3518_s29 = sphi %s3653_s29, %s41_s29   ;;  %s3514_s28 = sphi %s3651_s28, %s4455_s28   ;;  %s3510_s27 = sphi %s3649_s27, %s4453_s27   ;;  %s3506_s26 = sphi %s3647_s26, %s4454_s26   ;;  %s3502_s25 = sphi %s3645_s25, %s4452_s25   ;;  %s3498_s24 = sphi %s3643_s24, %s4451_s24  }
  0x17   : > { %4404 = sst [smem:[#allocation42_spill]] %s3502_s25  ;;  %p2329_p0 = scmp.ge.s32.totalorder %s3518_s29, 1 }
  0x18   : > { %4405 = sst [smem:[#allocation43_spill]] %s3506_s26  ;;  %p3677_p1 = scmp.eq.s32.totalorder %s4376_s0, 0 }
  0x19   : > { %4406 = sst [smem:[#allocation44_spill]] %s3510_s27  ;;  %p448_p2 = scmp.lt.s32.totalorder %s3518_s29, 3 }
  0x1a   : > { %4407 = sst [smem:[#allocation45_spill]] %s3514_s28  ;;  %s3520_s19 = smov [#allocation6]  }
  0x1b   : > { %4408 = sst [smem:[#allocation46_spill]] %s3518_s29  ;;  %p3682_p3 = pnand %p2329_p0, %p448_p2 }
  0x1c   : > { %s4409_s30 = scalar_select %p3677_p1, 1, 0 }
  0x1d   : > { %s4411_s18 = scalar_select %p3682_p3, 1, 0 }
  0x1e   : > { %4410 = sst [smem:[#allocation47_spill]] %s4409_s30  ;;  %s461_s1 = sshll.u32 %s3520_s19, 4  ;;  %s462_s1 = int_to_ptr.vmem [resolvable:$true] %s461_s1 }
  0x1f   : > { %4412 = sst [smem:[#allocation48_spill]] %s4411_s18  ;;  %p2660_p5 = pneg %p3682_p3 }
  0x20   : > { %s3521_s20 = smov [#allocation9]   ;;  %s3522_s23 = smov [#allocation12]  }
  0x21   : > { %s482_s21 = sshll.u32 %s3521_s20, 4  ;;  %p3691_p6 = pnand %p2660_p5, %p3677_p1  ;;  %s3695_s21 = int_to_ptr.vmem [resolvable:$true] %s482_s21 }
  0x22   : > { %s3697_s0 = sshll.u32 %s3522_s23, 4  ;;  %s4414_s19 = sld [smem:[#allocation50_spill]]  ;;  %s507_s0 = int_to_ptr.vmem [resolvable:$true] %s3697_s0 }
  0x23   : > { %p3707_p8 = pneg %p3691_p6 }
  0x28   : > { %s2926_s24 = scalar_lea.hbm %s4414_s19, 16 }
  0x29   : > { %p2927_p7 = scmp.ne.s32.totalorder %s4414_s19, %s2926_s24  ;;  %p2933_p11 = scmp.lt.u32.totalorder %s2926_s24, %s4414_s19 }
  0x2b   : > { %p2929_p9 = pnand %p3707_p8, %p2927_p7 }
  0x2d   : > { %p2930_p10 = pneg %p2929_p9 }
  0x2f   : > { %p2935_p12 = pnand %p2933_p11, %p2930_p10 }
  0x31   : > { %2938 = shalt.err (!%p2935_p12)
}
  0x32   : > { %s2939_s17 = scalar_lea.vmem %s462_s1, 16  ;;  %s2946_s25 = scalar_lea.vmem %s462_s1, 32 }
  0x33   : > { %p2940_p13 = scmp.ne.s32.totalorder %s462_s1, %s2939_s17  ;;  %p2947_p5 = scmp.lt.s32.totalorder %s462_s1, %s462_s1 }
  0x34   : > { %p2948_p4 = scmp.lt.s32.totalorder %s2946_s25, %s2939_s17 }
  0x35   : > { %p2942_p0 = pnand %p2940_p13, %p3707_p8 }
  0x36   : > { %p2949_p3 = por %p2948_p4, %p2947_p5 }
  0x37   : > { %p2943_p2 = pneg %p2942_p0 }
  0x39   : > { %p2950_p1 = pnand %p2949_p3, %p2943_p2 }
  0x3b   : > { %2953 = shalt.err (!%p2950_p1)
}
  0x3c   : > { %2663 = dma.hbm_to_vmem [thread:$0]  (!%p3691_p6), %s4414_s19, 16, %s462_s1, [#allocation7]  }
  0x3d   : > { %s4416_s3 = sld [smem:[#allocation52_spill]] }
  0x43   : > { %s2954_s23 = scalar_lea.hbm %s4416_s3, 512 }
  0x44   : > { %p2955_p7 = scmp.ne.s32.totalorder %s4416_s3, %s2954_s23  ;;  %p2961_p1 = scmp.lt.u32.totalorder %s2954_s23, %s4416_s3 }
  0x46   : > { %p2957_p9 = pnand %p2955_p7, %p3707_p8 }
  0x48   : > { %p2958_p4 = pneg %p2957_p9 }
  0x4a   : > { %p2963_p3 = pnand %p2961_p1, %p2958_p4 }
  0x4c   : > { %2966 = shalt.err (!%p2963_p3)
}
  0x4d   : > { %s2967_s1 = scalar_lea.vmem %s3695_s21, 512  ;;  %p2975_p13 = scmp.lt.s32.totalorder %s3695_s21, %s3695_s21 }
  0x4e   : > { %p2968_p10 = scmp.ne.s32.totalorder %s3695_s21, %s2967_s1  ;;  %p2976_p0 = scmp.lt.s32.totalorder %s2967_s1, %s2967_s1 }
  0x50   : > { %p2970_p11 = pnand %p2968_p10, %p3707_p8  ;;  %p2977_p2 = por %p2976_p0, %p2975_p13 }
  0x52   : > { %p2971_p12 = pneg %p2970_p11 }
  0x54   : > { %p2978_p5 = pnand %p2977_p2, %p2971_p12 }
  0x56   : > { %2981 = shalt.err (!%p2978_p5)
}
  0x57   : > { %s4391_s26 = smov 64   ;;  %s4392_s28 = smov 4  }
  0x58   : > { %2669 = dma.hbm_to_vmem [thread:$0]  (!%p3691_p6), %s4416_s3, 512, %s3695_s21, [#allocation10], %s4391_s26, %s4391_s26, %s4392_s28  }
  0x59   : > { %s4417_s5 = sld [smem:[#allocation54_spill]] }
  0x5f   : > { %s2982_s23 = scalar_lea.hbm %s4417_s5, 512 }
  0x60   : > { %p2983_p7 = scmp.ne.s32.totalorder %s4417_s5, %s2982_s23  ;;  %p2989_p1 = scmp.lt.u32.totalorder %s2982_s23, %s4417_s5 }
  0x62   : > { %p2985_p9 = pnand %p2983_p7, %p3707_p8 }
  0x64   : > { %p2986_p4 = pneg %p2985_p9 }
  0x66   : > { %p2991_p3 = pnand %p2989_p1, %p2986_p4 }
  0x68   : > { %2994 = shalt.err (!%p2991_p3)
}
  0x69   : > { %s2995_s27 = scalar_lea.vmem %s507_s0, 512  ;;  %p3003_p13 = scmp.lt.s32.totalorder %s507_s0, %s507_s0 }
  0x6a   : > { %p2996_p10 = scmp.ne.s32.totalorder %s507_s0, %s2995_s27  ;;  %p3004_p0 = scmp.lt.s32.totalorder %s2995_s27, %s2995_s27 }
  0x6c   : > { %p2998_p11 = pnand %p2996_p10, %p3707_p8  ;;  %p3005_p2 = por %p3004_p0, %p3003_p13 }
  0x6e   : > { %p2999_p12 = pneg %p2998_p11 }
  0x70   : > { %p3006_p5 = pnand %p3005_p2, %p2999_p12 }
  0x72   : > { %3009 = shalt.err (!%p3006_p5)
}
  0x73   : > { %2675 = dma.hbm_to_vmem [thread:$0]  (!%p3691_p6), %s4417_s5, 512, %s507_s0, [#allocation13], %s4391_s26, %s4391_s26, %s4392_s28  }
  0x74   : > { %s3525_s18 = smov [#allocation15]   ;;  %s3526_s30 = smov [#allocation18]  }
  0x75   : > { %s530_s24 = sshll.u32 %s3525_s18, 4  ;;  %s554_s23 = sshll.u32 %s3526_s30, 4  ;;  %s531_s24 = int_to_ptr.vmem [resolvable:$true] %s530_s24  ;;  %s555_s23 = int_to_ptr.vmem [resolvable:$true] %s554_s23 }
  0x76   : > { %s3010_s1 = scalar_lea.hbm %s4363_s7, 512 }
  0x77   : > { %p3011_p7 = scmp.ne.s32.totalorder %s4363_s7, %s3010_s1  ;;  %p3017_p1 = scmp.lt.u32.totalorder %s3010_s1, %s4363_s7 }
  0x79   : > { %p3013_p9 = pnand %p3011_p7, %p3707_p8 }
  0x7b   : > { %p3014_p4 = pneg %p3013_p9 }
  0x7d   : > { %p3019_p3 = pnand %p3017_p1, %p3014_p4 }
  0x7f   : > { %3022 = shalt.err (!%p3019_p3)
}
  0x80   : > { %s3023_s0 = scalar_lea.vmem %s531_s24, 512  ;;  %p3031_p13 = scmp.lt.s32.totalorder %s531_s24, %s531_s24 }
  0x81   : > { %p3024_p10 = scmp.ne.s32.totalorder %s531_s24, %s3023_s0  ;;  %p3032_p0 = scmp.lt.s32.totalorder %s3023_s0, %s3023_s0 }
  0x83   : > { %p3026_p11 = pnand %p3024_p10, %p3707_p8  ;;  %p3033_p2 = por %p3032_p0, %p3031_p13 }
  0x85   : > { %p3027_p12 = pneg %p3026_p11 }
  0x87   : > { %p3034_p5 = pnand %p3033_p2, %p3027_p12 }
  0x89   : > { %3037 = shalt.err (!%p3034_p5)
}
  0x8a   : > { %2681 = dma.hbm_to_vmem [thread:$0]  (!%p3691_p6), %s4363_s7, 512, %s531_s24, [#allocation16], %s4391_s26, %s4391_s26, %s4392_s28  }
  0x8b   : > { %s3038_s30 = scalar_lea.hbm %s4365_s9, 512 }
  0x8c   : > { %p3039_p7 = scmp.ne.s32.totalorder %s4365_s9, %s3038_s30  ;;  %p3045_p1 = scmp.lt.u32.totalorder %s3038_s30, %s4365_s9 }
  0x8e   : > { %p3041_p9 = pnand %p3039_p7, %p3707_p8 }
  0x90   : > { %p3042_p4 = pneg %p3041_p9 }
  0x92   : > { %p3047_p3 = pnand %p3045_p1, %p3042_p4 }
  0x94   : > { %3050 = shalt.err (!%p3047_p3)
}
  0x95   : > { %s3051_s21 = scalar_lea.vmem %s555_s23, 512  ;;  %p3059_p13 = scmp.lt.s32.totalorder %s555_s23, %s555_s23 }
  0x96   : > { %p3052_p10 = scmp.ne.s32.totalorder %s555_s23, %s3051_s21  ;;  %p3060_p0 = scmp.lt.s32.totalorder %s3051_s21, %s3051_s21 }
  0x98   : > { %p3054_p11 = pnand %p3052_p10, %p3707_p8  ;;  %p3061_p2 = por %p3060_p0, %p3059_p13 }
  0x9a   : > { %p3055_p12 = pneg %p3054_p11 }
  0x9c   : > { %p3062_p5 = pnand %p3061_p2, %p3055_p12 }
  0x9e   : > { %3065 = shalt.err (!%p3062_p5)
}
  0x9f   : > { %2687 = dma.hbm_to_vmem [thread:$0]  (!%p3691_p6), %s4365_s9, 512, %s555_s23, [#allocation19], %s4391_s26, %s4391_s26, %s4392_s28  }
  0xa0   : > { %s3527_s3 = smov [#allocation21]   ;;  %s3528_s19 = smov [#allocation24]  }
  0xa1   : > { %s579_s29 = sshll.u32 %s3527_s3, 4  ;;  %s600_s18 = sshll.u32 %s3528_s19, 4  ;;  %s580_s29 = int_to_ptr.vmem [resolvable:$true] %s579_s29  ;;  %s601_s18 = int_to_ptr.vmem [resolvable:$true] %s600_s18 }
  0xa2   : > { %s3066_s25 = scalar_lea.hbm %s4367_s11, 16 }
  0xa3   : > { %p3067_p7 = scmp.ne.s32.totalorder %s4367_s11, %s3066_s25  ;;  %p3073_p1 = scmp.lt.u32.totalorder %s3066_s25, %s4367_s11 }
  0xa5   : > { %p3069_p9 = pnand %p3067_p7, %p3707_p8 }
  0xa7   : > { %p3070_p4 = pneg %p3069_p9 }
  0xa9   : > { %p3075_p3 = pnand %p3073_p1, %p3070_p4 }
  0xab   : > { %3078 = shalt.err (!%p3075_p3)
}
  0xac   : > { %s3079_s23 = scalar_lea.vmem %s580_s29, 16  ;;  %s3086_s0 = scalar_lea.vmem %s580_s29, 32 }
  0xad   : > { %p3080_p10 = scmp.ne.s32.totalorder %s580_s29, %s3079_s23  ;;  %p3087_p13 = scmp.lt.s32.totalorder %s580_s29, %s580_s29 }
  0xae   : > { %p3088_p0 = scmp.lt.s32.totalorder %s3086_s0, %s3079_s23 }
  0xaf   : > { %p3082_p11 = pnand %p3080_p10, %p3707_p8 }
  0xb0   : > { %p3089_p2 = por %p3088_p0, %p3087_p13 }
  0xb1   : > { %p3083_p12 = pneg %p3082_p11 }
  0xb3   : > { %p3090_p5 = pnand %p3089_p2, %p3083_p12 }
  0xb5   : > { %3093 = shalt.err (!%p3090_p5)
}
  0xb6   : > { %2693 = dma.hbm_to_vmem [thread:$0]  (!%p3691_p6), %s4367_s11, 16, %s580_s29, [#allocation22]  }
  0xb7   : > { %s3094_s25 = scalar_lea.hbm %s4369_s13, 1024 }
  0xb8   : > { %p3095_p7 = scmp.ne.s32.totalorder %s4369_s13, %s3094_s25  ;;  %p3101_p1 = scmp.lt.u32.totalorder %s3094_s25, %s4369_s13 }
  0xba   : > { %p3097_p9 = pnand %p3095_p7, %p3707_p8 }
  0xbc   : > { %p3098_p4 = pneg %p3097_p9 }
  0xbe   : > { %p3103_p3 = pnand %p3101_p1, %p3098_p4 }
  0xc0   : > { %3106 = shalt.err (!%p3103_p3)
}
  0xc1   : > { %s3107_s23 = scalar_lea.vmem %s601_s18, 1024  ;;  %p3115_p13 = scmp.lt.s32.totalorder %s601_s18, %s601_s18 }
  0xc2   : > { %p3108_p10 = scmp.ne.s32.totalorder %s601_s18, %s3107_s23  ;;  %p3116_p0 = scmp.lt.s32.totalorder %s3107_s23, %s3107_s23 }
  0xc4   : > { %p3110_p11 = pnand %p3108_p10, %p3707_p8  ;;  %p3117_p2 = por %p3116_p0, %p3115_p13 }
  0xc6   : > { %p3111_p12 = pneg %p3110_p11 }
  0xc8   : > { %p3118_p5 = pnand %p3117_p2, %p3111_p12 }
  0xca   : > { %3121 = shalt.err (!%p3118_p5)
}
  0xcb   : > { %s4393_s29 = smov 128   ;;  %s4394_s0 = smov 8  }
  0xcc   : > { %2699 = dma.hbm_to_vmem [thread:$0]  (!%p3691_p6), %s4369_s13, 1024, %s601_s18, [#allocation25], %s4393_s29, %s4393_s29, %s4394_s0  }
  0xcd   : > { %s3531_s30 = smov [#allocation27]   ;;  %s3532_s25 = smov [#allocation8]  }
  0xce   : > { %s624_s17 = sshll.u32 %s3531_s30, 4  ;;  %s472_s1 = sshll.u32 %s3532_s25, 4  ;;  %s625_s17 = int_to_ptr.vmem [resolvable:$true] %s624_s17  ;;  %s473_s1 = int_to_ptr.vmem [resolvable:$true] %s472_s1 }
  0xcf   : > { %s3122_s24 = scalar_lea.hbm %s4371_s15, 2048 }
  0xd0   : > { %p3123_p7 = scmp.ne.s32.totalorder %s4371_s15, %s3122_s24  ;;  %p3129_p1 = scmp.lt.u32.totalorder %s3122_s24, %s4371_s15 }
  0xd2   : > { %p3125_p9 = pnand %p3123_p7, %p3707_p8 }
  0xd4   : > { %p3126_p4 = pneg %p3125_p9 }
  0xd6   : > { %p3131_p3 = pnand %p3129_p1, %p3126_p4 }
  0xd8   : > { %3134 = shalt.err (!%p3131_p3)
}
  0xd9   : > { %s3135_s18 = scalar_lea.vmem %s625_s17, 2048  ;;  %p3143_p13 = scmp.lt.s32.totalorder %s625_s17, %s625_s17 }
  0xda   : > { %p3136_p10 = scmp.ne.s32.totalorder %s625_s17, %s3135_s18  ;;  %p3144_p0 = scmp.lt.s32.totalorder %s3135_s18, %s3135_s18 }
  0xdc   : > { %p3138_p11 = pnand %p3136_p10, %p3707_p8  ;;  %p3145_p2 = por %p3144_p0, %p3143_p13 }
  0xde   : > { %p3139_p12 = pneg %p3138_p11 }
  0xe0   : > { %p3146_p5 = pnand %p3145_p2, %p3139_p12 }
  0xe2   : > { %3149 = shalt.err (!%p3146_p5)
}
  0xe3   : > { %s4418_s26 = smov 4   ;;  %s4419_s3 = smov 64  }
  0xe4   : > { %2705 = dma.hbm_to_vmem [thread:$0]  (!%p3691_p6), %s4371_s15, 2048, %s625_s17, [#allocation28], %s4419_s3, %s4419_s3, %s4418_s26  }
  0xe5   : > { %s4420_s2 = sld [smem:[#allocation51_spill]] }
  0xeb   : > { %s3150_s25 = scalar_lea.hbm %s4420_s2, 16 }
  0xec   : > { %p3151_p7 = scmp.ne.s32.totalorder %s4420_s2, %s3150_s25  ;;  %p3157_p1 = scmp.lt.u32.totalorder %s3150_s25, %s4420_s2 }
  0xee   : > { %p3153_p9 = pnand %p3151_p7, %p3707_p8 }
  0xf0   : > { %p3154_p4 = pneg %p3153_p9 }
  0xf2   : > { %p3159_p3 = pnand %p3157_p1, %p3154_p4 }
  0xf4   : > { %3162 = shalt.err (!%p3159_p3)
}
  0xf5   : > { %s3163_s18 = scalar_lea.vmem %s473_s1, 16  ;;  %s3170_s17 = scalar_lea.vmem %s473_s1, 32 }
  0xf6   : > { %p3164_p10 = scmp.ne.s32.totalorder %s473_s1, %s3163_s18  ;;  %p3171_p13 = scmp.lt.s32.totalorder %s473_s1, %s473_s1 }
  0xf7   : > { %p3172_p0 = scmp.lt.s32.totalorder %s3170_s17, %s3163_s18 }
  0xf8   : > { %p3166_p11 = pnand %p3164_p10, %p3707_p8 }
  0xf9   : > { %p3173_p2 = por %p3172_p0, %p3171_p13 }
  0xfa   : > { %p3167_p12 = pneg %p3166_p11 }
  0xfc   : > { %p3174_p5 = pnand %p3173_p2, %p3167_p12 }
  0xfe   : > { %3177 = shalt.err (!%p3174_p5)
}
  0xff   : > { %2666 = dma.hbm_to_vmem [thread:$0]  (!%p3691_p6), %s4420_s2, 16, %s473_s1, [#allocation7]  }
 0x100   : > { %s3533_s5 = smov [#allocation11]   ;;  %s3534_s19 = smov [#allocation14]  }
 0x101   : > { %s496_s28 = sshll.u32 %s3533_s5, 4  ;;  %s520_s30 = sshll.u32 %s3534_s19, 4  ;;  %s497_s28 = int_to_ptr.vmem [resolvable:$true] %s496_s28  ;;  %s521_s30 = int_to_ptr.vmem [resolvable:$true] %s520_s30 }
 0x102   : > { %s4421_s4 = sld [smem:[#allocation53_spill]] }
 0x108   : > { %s3178_s21 = scalar_lea.hbm %s4421_s4, 16 }
 0x109   : > { %p3179_p7 = scmp.ne.s32.totalorder %s4421_s4, %s3178_s21  ;;  %p3185_p1 = scmp.lt.u32.totalorder %s3178_s21, %s4421_s4 }
 0x10b   : > { %p3181_p9 = pnand %p3179_p7, %p3707_p8 }
 0x10d   : > { %p3182_p4 = pneg %p3181_p9 }
 0x10f   : > { %p3187_p3 = pnand %p3185_p1, %p3182_p4 }
 0x111   : > { %3190 = shalt.err (!%p3187_p3)
}
 0x112   : > { %s3191_s1 = scalar_lea.vmem %s497_s28, 16  ;;  %s3198_s26 = scalar_lea.vmem %s497_s28, 32 }
 0x113   : > { %p3192_p10 = scmp.ne.s32.totalorder %s497_s28, %s3191_s1  ;;  %p3199_p13 = scmp.lt.s32.totalorder %s497_s28, %s497_s28 }
 0x114   : > { %p3200_p0 = scmp.lt.s32.totalorder %s3198_s26, %s3191_s1 }
 0x115   : > { %p3194_p11 = pnand %p3192_p10, %p3707_p8 }
 0x116   : > { %p3201_p2 = por %p3200_p0, %p3199_p13 }
 0x117   : > { %p3195_p12 = pneg %p3194_p11 }
 0x119   : > { %p3202_p5 = pnand %p3201_p2, %p3195_p12 }
 0x11b   : > { %3205 = shalt.err (!%p3202_p5)
}
 0x11c   : > { %2672 = dma.hbm_to_vmem [thread:$0]  (!%p3691_p6), %s4421_s4, 16, %s497_s28, [#allocation10]  }
 0x11d   : > { %s3206_s27 = scalar_lea.hbm %s4362_s6, 16 }
 0x11e   : > { %p3207_p7 = scmp.ne.s32.totalorder %s4362_s6, %s3206_s27  ;;  %p3213_p1 = scmp.lt.u32.totalorder %s3206_s27, %s4362_s6 }
 0x120   : > { %p3209_p9 = pnand %p3207_p7, %p3707_p8 }
 0x122   : > { %p3210_p4 = pneg %p3209_p9 }
 0x124   : > { %p3215_p3 = pnand %p3213_p1, %p3210_p4 }
 0x126   : > { %3218 = shalt.err (!%p3215_p3)
}
 0x127   : > { %s3219_s17 = scalar_lea.vmem %s521_s30, 16  ;;  %s3226_s28 = scalar_lea.vmem %s521_s30, 32 }
 0x128   : > { %p3220_p10 = scmp.ne.s32.totalorder %s521_s30, %s3219_s17  ;;  %p3227_p13 = scmp.lt.s32.totalorder %s521_s30, %s521_s30 }
 0x129   : > { %p3228_p0 = scmp.lt.s32.totalorder %s3226_s28, %s3219_s17 }
 0x12a   : > { %p3222_p11 = pnand %p3220_p10, %p3707_p8 }
 0x12b   : > { %p3229_p2 = por %p3228_p0, %p3227_p13 }
 0x12c   : > { %p3223_p12 = pneg %p3222_p11 }
 0x12e   : > { %p3230_p5 = pnand %p3229_p2, %p3223_p12 }
 0x130   : > { %3233 = shalt.err (!%p3230_p5)
}
 0x131   : > { %2678 = dma.hbm_to_vmem [thread:$0]  (!%p3691_p6), %s4362_s6, 16, %s521_s30, [#allocation13]  }
 0x132   : > { %s3535_s3 = smov [#allocation17]   ;;  %s3536_s19 = smov [#allocation20]  }
 0x133   : > { %s544_s5 = sshll.u32 %s3535_s3, 4  ;;  %s568_s25 = sshll.u32 %s3536_s19, 4  ;;  %s545_s5 = int_to_ptr.vmem [resolvable:$true] %s544_s5  ;;  %s569_s25 = int_to_ptr.vmem [resolvable:$true] %s568_s25 }
 0x134   : > { %s3234_s24 = scalar_lea.hbm %s4364_s8, 16 }
 0x135   : > { %p3235_p7 = scmp.ne.s32.totalorder %s4364_s8, %s3234_s24  ;;  %p3241_p1 = scmp.lt.u32.totalorder %s3234_s24, %s4364_s8 }
 0x137   : > { %p3237_p9 = pnand %p3235_p7, %p3707_p8 }
 0x139   : > { %p3238_p4 = pneg %p3237_p9 }
 0x13b   : > { %p3243_p3 = pnand %p3241_p1, %p3238_p4 }
 0x13d   : > { %3246 = shalt.err (!%p3243_p3)
}
 0x13e   : > { %s3247_s30 = scalar_lea.vmem %s545_s5, 16  ;;  %s3254_s1 = scalar_lea.vmem %s545_s5, 32 }
 0x13f   : > { %p3248_p10 = scmp.ne.s32.totalorder %s545_s5, %s3247_s30  ;;  %p3255_p13 = scmp.lt.s32.totalorder %s545_s5, %s545_s5 }
 0x140   : > { %p3256_p0 = scmp.lt.s32.totalorder %s3254_s1, %s3247_s30 }
 0x141   : > { %p3250_p11 = pnand %p3248_p10, %p3707_p8 }
 0x142   : > { %p3257_p2 = por %p3256_p0, %p3255_p13 }
 0x143   : > { %p3251_p12 = pneg %p3250_p11 }
 0x145   : > { %p3258_p5 = pnand %p3257_p2, %p3251_p12 }
 0x147   : > { %3261 = shalt.err (!%p3258_p5)
}
 0x148   : > { %2684 = dma.hbm_to_vmem [thread:$0]  (!%p3691_p6), %s4364_s8, 16, %s545_s5, [#allocation16]  }
 0x149   : > { %s3262_s21 = scalar_lea.hbm %s4366_s10, 16 }
 0x14a   : > { %p3263_p7 = scmp.ne.s32.totalorder %s4366_s10, %s3262_s21  ;;  %p3269_p1 = scmp.lt.u32.totalorder %s3262_s21, %s4366_s10 }
 0x14c   : > { %p3265_p9 = pnand %p3263_p7, %p3707_p8 }
 0x14e   : > { %p3266_p4 = pneg %p3265_p9 }
 0x150   : > { %p3271_p3 = pnand %p3269_p1, %p3266_p4 }
 0x152   : > { %3274 = shalt.err (!%p3271_p3)
}
 0x153   : > { %s3275_s28 = scalar_lea.vmem %s569_s25, 16  ;;  %s3282_s5 = scalar_lea.vmem %s569_s25, 32 }
 0x154   : > { %p3276_p10 = scmp.ne.s32.totalorder %s569_s25, %s3275_s28  ;;  %p3283_p13 = scmp.lt.s32.totalorder %s569_s25, %s569_s25 }
 0x155   : > { %p3284_p0 = scmp.lt.s32.totalorder %s3282_s5, %s3275_s28 }
 0x156   : > { %p3278_p11 = pnand %p3276_p10, %p3707_p8 }
 0x157   : > { %p3285_p2 = por %p3284_p0, %p3283_p13 }
 0x158   : > { %p3279_p12 = pneg %p3278_p11 }
 0x15a   : > { %p3286_p5 = pnand %p3285_p2, %p3279_p12 }
 0x15c   : > { %3289 = shalt.err (!%p3286_p5)
}
 0x15d   : > { %2690 = dma.hbm_to_vmem [thread:$0]  (!%p3691_p6), %s4366_s10, 16, %s569_s25, [#allocation19]  }
 0x15e   : > { %s3537_s26 = smov [#allocation23]   ;;  %s3538_s19 = smov [#allocation26]  }
 0x15f   : > { %s590_s3 = sshll.u32 %s3537_s26, 4  ;;  %s614_s27 = sshll.u32 %s3538_s19, 4  ;;  %s591_s3 = int_to_ptr.vmem [resolvable:$true] %s590_s3  ;;  %s615_s27 = int_to_ptr.vmem [resolvable:$true] %s614_s27 }
 0x160   : > { %s3290_s23 = scalar_lea.hbm %s4368_s12, 16 }
 0x161   : > { %p3291_p7 = scmp.ne.s32.totalorder %s4368_s12, %s3290_s23  ;;  %p3297_p1 = scmp.lt.u32.totalorder %s3290_s23, %s4368_s12 }
 0x163   : > { %p3293_p9 = pnand %p3291_p7, %p3707_p8 }
 0x165   : > { %p3294_p4 = pneg %p3293_p9 }
 0x167   : > { %p3299_p3 = pnand %p3297_p1, %p3294_p4 }
 0x169   : > { %3302 = shalt.err (!%p3299_p3)
}
 0x16a   : > { %s3303_s25 = scalar_lea.vmem %s591_s3, 16  ;;  %s3310_s30 = scalar_lea.vmem %s591_s3, 32 }
 0x16b   : > { %p3304_p10 = scmp.ne.s32.totalorder %s591_s3, %s3303_s25  ;;  %p3311_p13 = scmp.lt.s32.totalorder %s591_s3, %s591_s3 }
 0x16c   : > { %p3312_p0 = scmp.lt.s32.totalorder %s3310_s30, %s3303_s25 }
 0x16d   : > { %p3306_p11 = pnand %p3304_p10, %p3707_p8 }
 0x16e   : > { %p3313_p2 = por %p3312_p0, %p3311_p13 }
 0x16f   : > { %p3307_p12 = pneg %p3306_p11 }
 0x171   : > { %p3314_p5 = pnand %p3313_p2, %p3307_p12 }
 0x173   : > { %3317 = shalt.err (!%p3314_p5)
}
 0x174   : > { %2696 = dma.hbm_to_vmem [thread:$0]  (!%p3691_p6), %s4368_s12, 16, %s591_s3, [#allocation22]  }
 0x175   : > { %s3318_s24 = scalar_lea.hbm %s4370_s14, 32 }
 0x176   : > { %p3319_p7 = scmp.ne.s32.totalorder %s4370_s14, %s3318_s24  ;;  %p3325_p1 = scmp.lt.u32.totalorder %s3318_s24, %s4370_s14 }
 0x178   : > { %p3321_p9 = pnand %p3319_p7, %p3707_p8 }
 0x17a   : > { %p3322_p4 = pneg %p3321_p9 }
 0x17c   : > { %p3327_p3 = pnand %p3325_p1, %p3322_p4 }
 0x17e   : > { %3330 = shalt.err (!%p3327_p3)
}
 0x17f   : > { %s3331_s5 = scalar_lea.vmem %s615_s27, 32  ;;  %p3339_p13 = scmp.lt.s32.totalorder %s615_s27, %s615_s27 }
 0x180   : > { %p3332_p10 = scmp.ne.s32.totalorder %s615_s27, %s3331_s5  ;;  %p3340_p0 = scmp.lt.s32.totalorder %s3331_s5, %s3331_s5 }
 0x182   : > { %p3334_p11 = pnand %p3332_p10, %p3707_p8  ;;  %p3341_p2 = por %p3340_p0, %p3339_p13 }
 0x184   : > { %p3335_p12 = pneg %p3334_p11 }
 0x186   : > { %p3342_p5 = pnand %p3341_p2, %p3335_p12 }
 0x188   : > { %3345 = shalt.err (!%p3342_p5)
}
 0x189   : > { %2702 = dma.hbm_to_vmem [thread:$0]  (!%p3691_p6), %s4370_s14, 32, %s615_s27, [#allocation25]  }
 0x18a   : > { %s3539_s30 = smov [#allocation29]   ;;  %s3346_s21 = scalar_lea.hbm %s4372_s16, 16 }
 0x18b   : > { %s638_s1 = sshll.u32 %s3539_s30, 4  ;;  %p3347_p7 = scmp.ne.s32.totalorder %s4372_s16, %s3346_s21  ;;  %s639_s1 = int_to_ptr.vmem [resolvable:$true] %s638_s1 }
 0x18c   : > { %p3353_p1 = scmp.lt.u32.totalorder %s3346_s21, %s4372_s16 }
 0x18d   : > { %p3349_p9 = pnand %p3347_p7, %p3707_p8 }
 0x18f   : > { %p3350_p4 = pneg %p3349_p9 }
 0x191   : > { %p3355_p3 = pnand %p3353_p1, %p3350_p4 }
 0x193   : > { %3358 = shalt.err (!%p3355_p3)
}
 0x194   : > { %s3359_s27 = scalar_lea.vmem %s639_s1, 16  ;;  %s3366_s28 = scalar_lea.vmem %s639_s1, 32 }
 0x195   : > { %p3360_p10 = scmp.ne.s32.totalorder %s639_s1, %s3359_s27  ;;  %p3367_p13 = scmp.lt.s32.totalorder %s639_s1, %s639_s1 }
 0x196   : > { %p3368_p0 = scmp.lt.s32.totalorder %s3366_s28, %s3359_s27 }
 0x197   : > { %p3362_p11 = pnand %p3360_p10, %p3707_p8 }
 0x198   : > { %p3369_p2 = por %p3368_p0, %p3367_p13 }
 0x199   : > { %p3363_p12 = pneg %p3362_p11 }
 0x19b   : > { %p3370_p5 = pnand %p3369_p2, %p3363_p12 }
 0x19d   : > { %3373 = shalt.err (!%p3370_p5)
}
 0x19e   : > { %s4422_s25 = sld [smem:[#allocation46_spill]]  ;;  %s4423_s30 = sld [smem:[#allocation45_spill]] }
 0x19f   : > { %s4424_s26 = sld [smem:[#allocation43_spill]]  ;;  %s4425_s19 = sld [smem:[#allocation42_spill]] }
 0x1a0   : > { %s4426_s20 = sld [smem:[#allocation41_spill]]  ;;  %s4427_s21 = sld [smem:[#allocation47_spill]] }
 0x1a1   : > { %2708 = dma.hbm_to_vmem [thread:$0]  (!%p3691_p6), %s4372_s16, 16, %s639_s1, [#allocation28]  }
 0x1a2   : > { %s4434_s29 = sld [smem:[#allocation49_spill]] }
 0x1a4   : > { %s2328_s24 = sadd.s32 4294967294, %s4422_s25   ;;  %s53_s23 = sadd.s32 1, %s4423_s30 }
 0x1a5   : > { %p55_p8 = scmp.ge.s32.totalorder %s53_s23, 2  ;;  %s60_s22 = sadd.s32 1, %s4424_s26 }
 0x1a6   : > { %p67_p7 = scmp.ne.s32.totalorder %s4424_s26, %s4425_s19  ;;  %p68_p9 = scmp.eq.s32.totalorder %s4422_s25, 0 }
 0x1a7   : > { %s4457_s23 = smov (%p55_p8, %s53_s23), 0  ;;  %p73_p1 = scmp.ne.s32.totalorder %s4425_s19, %s4426_s20 }
 0x1a8   : > { %p4025_p4 = por %p68_p9, %p67_p7  ;;  %s57_s1 = ssub.s32 %s4423_s30, %s4457_s23 }
 0x1a9   : > { %s4429_s17 = sadd.s32 4294967295, %s4422_s25   ;;  %p58_p3 = scmp.eq.s32.totalorder %s57_s1, 0 }
 0x1aa   : > { %p435_p6 = scmp.eq.s32.totalorder %s4429_s17, 1  ;;  %p4430_p10 = scmp.ne.s32.totalorder %s4427_s21, 0 }
 0x1ab   : > { %p441_p13 = scmp.eq.s32.totalorder %s2328_s24, 1  ;;  %p2733_p2 = scmp.lt.s32.totalorder %s4422_s25, 2 }
 0x1ac   : > { %p4037_p11 = por %p4430_p10, %p73_p1  ;;  %p4041_p12 = por %p435_p6, %p67_p7 }
 0x1ad   : > { %s4046_s5 = scalar_select %p58_p3, %s4424_s26, %s60_s22  }
 0x1ae   : > { %s4432_s28 = scalar_select %p4041_p12, 1, 0 }
 0x1af   : > { %p4048_p0 = por %p441_p13, %p73_p1  ;;  %s649_s19 = sand.u32 1, %s4424_s26  }
 0x1b0   : > { %s2436_s20 = sshll.u32 %s4423_s30, 8  ;;  %s2347_s1 = sshll.u32 %s649_s19, 4 }
 0x1b1   : > { %s4433_s3 = scalar_select %p4048_p0, 1, 0 }
 0x1b2   : > { %s4435_s0 = smov %s4434_s29  ;;  %s4058_s2 = scalar_lea.hbm %s4434_s29, %s2436_s20 }
 0x1b3   : > { %s653_s24 = scalar_lea.vmem [#allocation3], %s2347_s1  ;;  %p4062_p5 = pnand %p2733_p2, %p4025_p4 }
 0x1b4   : > { %s660_s22 = sshll.u32 %s653_s24, 4  ;;  %s4068_s25 = scalar_lea.sflag [#allocation4], %s649_s19  ;;  %s4066_s22 = int_to_ptr.vmem [resolvable:$true] %s660_s22 }
 0x1b5   : > { %s3374_s30 = scalar_lea.hbm %s4058_s2, 256  ;;  %p3376_p7 = pneg %p4062_p5 }
 0x1b6   : > { %p3375_p8 = scmp.ne.s32.totalorder %s4058_s2, %s3374_s30  ;;  %s3379_s18 = scalar_lea.hbm %s4435_s0, 512 }
 0x1b7   : > { %p3380_p4 = scmp.lt.u32.totalorder %s4058_s2, %s4435_s0  ;;  %p3381_p6 = scmp.lt.u32.totalorder %s3379_s18, %s3374_s30 }
 0x1b8   : > { %p3377_p9 = pnand %p3376_p7, %p3375_p8  ;;  %p3383_p10 = scmp.lt.u32.totalorder %s3374_s30, %s4058_s2 }
 0x1b9   : > { %p3382_p3 = por %p3381_p6, %p3380_p4 }
 0x1ba   : > { %p3378_p1 = pneg %p3377_p9 }
 0x1bb   : > { %p3384_p13 = por %p3383_p10, %p3382_p3 }
 0x1bd   : > { %p3385_p2 = pnand %p3384_p13, %p3378_p1 }
 0x1bf   : > { %3388 = shalt.err (!%p3385_p2)
}
 0x1c0   : > { %s3389_s19 = scalar_lea.vmem %s4066_s22, 256  ;;  %s3540_s21 = smov [#allocation3]  }
 0x1c1   : > { %p3390_p8 = scmp.ne.s32.totalorder %s4066_s22, %s3389_s19  ;;  %s3394_s17 = sshll.u32 %s3540_s21, 4  ;;  %s3395_s17 = int_to_ptr.vmem [resolvable:$false] %s3394_s17 }
 0x1c2   : > { %s3396_s24 = scalar_lea.vmem %s3395_s17, 512  ;;  %p3397_p12 = scmp.lt.s32.totalorder %s4066_s22, %s3395_s17 }
 0x1c3   : > { %p3392_p9 = pnand %p3390_p8, %p3376_p7  ;;  %p3398_p4 = scmp.lt.s32.totalorder %s3396_s24, %s3389_s19 }
 0x1c5   : > { %p3393_p0 = pneg %p3392_p9  ;;  %p3399_p6 = por %p3398_p4, %p3397_p12 }
 0x1c7   : > { %p3400_p3 = pnand %p3399_p6, %p3393_p0 }
 0x1c9   : > { %3403 = shalt.err (!%p3400_p3)
}
 0x1ca   : > { %s4437_s30 = smov 8   ;;  %s4438_s29 = smov 128  }
 0x1cb   : > { %2712 = dma.hbm_to_vmem [thread:$0]  (!%p4062_p5), %s4058_s2, 256, %s4066_s22, %s4068_s25, %s4438_s29, %s4438_s29, %s4437_s30  }
 0x1cc   : > { %s4439_s26 = sld [smem:[#allocation48_spill]] }
 0x1d2   : > { %p4440_p7 = scmp.ne.s32.totalorder %s4439_s26, 0 }
 0x1d3   : > { %s4441_s18 = sld [smem:[#allocation42_spill]] (!%p4440_p7) }
 0x1d4   : > { %672 = sbr.rel (%p4440_p7) target bundleno = 3116 (0xc2c), region = 88 }
 0x1d9   : > { %s4102_s20 = sand.u32 (!%p4440_p7), 1, %s4441_s18  }
 0x1da   : > { %s2351_s1 = sshll.u32 (!%p4440_p7), %s4102_s20, 4  ;;  %s675_s19 = scalar_lea.sflag (!%p4440_p7), [#allocation4], %s4102_s20 }
 0x1db   : > { %s678_s4 = scalar_lea.vmem [#allocation3], %s2351_s1 }
 0x1dc   : > { %3457 = dma.done.wait (%p4037_p11), %s675_s19, 256  }
 0x1dd   : > { %3459 = vsyncadd (%p4037_p11), %s675_s19, 4294967040  ;;  %s4442_s2 = sld [smem:[#allocation47_spill]] }
 0x1e3   : > { %p4443_p12 = scmp.ne.s32.totalorder %s4442_s2, 0 }
 0x1e5   : > { %3461 = dma.done.wait (%p4443_p12), [#allocation7], 32  }
 0x1e6   : > { %3463 = vsyncadd (%p4443_p12), [#allocation7], 4294967264 }
 0x1e7   : > { %3465 = dma.done.wait (%p4443_p12), [#allocation10], 528  }
 0x1e8   : > { %3467 = vsyncadd (%p4443_p12), [#allocation10], 4294966768 }
 0x1e9   : > { %3469 = dma.done.wait (%p4443_p12), [#allocation13], 528  }
 0x1ea   : > { %3471 = vsyncadd (%p4443_p12), [#allocation13], 4294966768 }
 0x1eb   : > { %3473 = dma.done.wait (%p4443_p12), [#allocation16], 528  }
 0x1ec   : > { %3475 = vsyncadd (%p4443_p12), [#allocation16], 4294966768 }
 0x1ed   : > { %3477 = dma.done.wait (%p4443_p12), [#allocation19], 528  }
 0x1ee   : > { %3479 = vsyncadd (%p4443_p12), [#allocation19], 4294966768 }
 0x1ef   : > { %3481 = dma.done.wait (%p4443_p12), [#allocation22], 32  }
 0x1f0   : > { %3483 = vsyncadd (%p4443_p12), [#allocation22], 4294967264 }
 0x1f1   : > { %3485 = dma.done.wait (%p4443_p12), [#allocation25], 1056  }
 0x1f2   : > { %3487 = vsyncadd (%p4443_p12), [#allocation25], 4294966240 }
 0x1f3   : > { %3489 = dma.done.wait (%p4443_p12), [#allocation28], 2064  }
 0x1f4   : > { %3491 = vsyncadd (%p4443_p12), [#allocation28], 4294965232  ;;  %vm800_vm0 = vcmask 523264   ;;  %v4144_v0 = vld [vmem:[%s678_s4] sm:$0xff]  ;;  %v4146_v1 = vld [vmem:[%s678_s4 + $0x8] sm:$0xff]  ;;  %v3541_v25 = vmov 0.0  }
 0x1f5   : > { %v848_v2 = vsel %vm800_vm0, %v4144_v0, 0.0  ;;  %v851_v3 = vsel %vm800_vm0, %v4146_v1, 0.0  ;;  %v2830_v24 = vld [vmem:[#allocation9] sm:$0xff]   ;;  %2496 = vmatprep.subr.bf16.mxu1 %v3541_v25  ;;  %2520 = vmatprep.subr.bf16.mxu0 %v3541_v25  ;;  %v2831_v26 = vld [vmem:[#allocation9 + $0x8] sm:$0xff]   ;;  %v2833_v28 = vld [vmem:[#allocation9 + $0x10] sm:$0xff]   ;;  %vm3542_vm1 = vmmov 0  }
 0x1f6   : > { %849 = vadd.xlane.f32.xlu0 %v848_v2  ;;  %802 = vadd.xlane.f32.xlu1 %v848_v2  ;;  %v2832_v27 = vld [vmem:[#allocation15] sm:$0xff]   ;;  %v2834_v29 = vld [vmem:[#allocation15 + $0x8] sm:$0xff]   ;;  %v2835_v30 = vld [vmem:[#allocation9 + $0x18] sm:$0xff]   ;;  %s3543_s27 = smov 112   ;;  %vm1130_vm2 = vcmask 130048   ;;  %s3544_s22 = smov 96  }
 0x1f7   : > { %2497 = vmatpush3.bf16.msra.mxu1 %v2830_v24  ;;  %2521 = vmatpush3.bf16.msra.mxu0 %v2832_v27  ;;  %v2836_v31 = vld [vmem:[#allocation15 + $0x10] sm:$0xff]   ;;  %v2838_v32 = vld [vmem:[#allocation15 + $0x18] sm:$0xff]   ;;  %s3545_s25 = smov 80   ;;  %s3546_s21 = smov 16   ;;  %vm1376_vm3 = vcmask 261248   ;;  %vm1504_vm4 = vcmask 392448  }
 0x1f8   : > { %2498 = vmatprep.subr.bf16.mxu1 %v3541_v25  ;;  %2522 = vmatprep.subr.bf16.mxu0 %v3541_v25  ;;  %v2369_v47 = vld [vmem:[#allocation6] ss:$0 sm:$0xff]  ;;  %v2370_v53 = vld [vmem:[#allocation8] ss:$0 sm:$0xff]  ;;  %v2837_v60 = vld [vmem:[#allocation12] sm:$0xff]   ;;  %s3547_s17 = smov 32  }
 0x1f9   : > { %2504 = vmatprep.mubr.msk.bf16.mxu1 %vm3542_vm1, %v3541_v25  ;;  %2528 = vmatprep.mubr.msk.bf16.mxu0 %vm3542_vm1, %v3541_v25  ;;  %s3548_s24 = smov 48   ;;  %vm1632_vm5 = vcmask 523648   ;;  %s4444_s30 = sld [smem:[#allocation44_spill]] }
 0x1fa   : > { %852 = vadd.xlane.f32.xlu0 %v851_v3  ;;  %805 = vadd.xlane.f32.xlu1 %v851_v3  ;;  %v2839_v3 = vld [vmem:[#allocation12 + $0x8] sm:$0xff]   ;;  %s792_s26 = scalar_lea.vmem [#allocation30], %s2351_s1  ;;  %s4445_s2 = sld [smem:[#allocation55_spill]] }
 0x1fb   : > { %2499 = vmatpush3.bf16.msra.mxu1 %v2831_v26  ;;  %2523 = vmatpush3.bf16.msra.mxu0 %v2834_v29  ;;  %v2377_v26 = vld [vmem:[#allocation14] ss:$0 sm:$0xff]  ;;  %s2089_s18 = sshll.u32 %s792_s26, 4  ;;  %s2074_s1 = scalar_lea.sflag [#allocation5], %s4102_s20  ;;  %s4304_s18 = int_to_ptr.vmem [resolvable:$true] %s2089_s18 }
 0x1fc   : > { %2500 = vmatprep.subr.bf16.mxu1 %v3541_v25  ;;  %2524 = vmatprep.subr.bf16.mxu0 %v3541_v25  ;;  %p4446_p0 = scmp.ne.s32.totalorder %s4432_s28, 0 }
 0x1ff   : > { %2501 = vmatpush3.bf16.msra.mxu1 %v2833_v28  ;;  %2525 = vmatpush3.bf16.msra.mxu0 %v2836_v31  ;;  %s2437_s29 = sshll.u32 %s4444_s30, 8 }
 0x200   : > { %2502 = vmatprep.subr.bf16.mxu1 %v3541_v25  ;;  %2526 = vmatprep.subr.bf16.mxu0 %v3541_v25 }
 0x203   : > { %2503 = vmatpush3.bf16.msra.mxu1 %v2835_v30  ;;  %2527 = vmatpush3.bf16.msra.mxu0 %v2838_v32 }
 0x204   : > { %2508 = vmatprep.subr.bf16.mxu1 %v3541_v25  ;;  %2544 = vmatprep.subr.bf16.mxu0 %v3541_v25 }
 0x283   : > { %v850_v4 = vpop.xlane.xlu0 %849  ;;  %v803_v5 = vpop.xlane.xlu1 %802 }
 0x284   : > { %v854_v6 = vmul.f32 0.015625, %v850_v4  ;;  %v808_v7 = vmul.f32 0.015625, %v803_v5  ;;  %v2840_v5 = vld [vmem:[#allocation12 + $0x10] sm:$0xff]  }
 0x286   : > { %v4153_v8 = vsub.f32 %v4144_v0, %v854_v6  ;;  %v4156_v9 = vsub.f32 %v4144_v0, %v808_v7  ;;  %v2841_v6 = vld [vmem:[#allocation12 + $0x18] sm:$0xff]  }
 0x287   : > { %v853_v10 = vpop.xlane.xlu0 %852  ;;  %v806_v11 = vpop.xlane.xlu1 %805  ;;  %v2371_v7 = vld [vmem:[#allocation11] ss:$0 sm:$0xff] }
 0x288   : > { %v855_v12 = vmul.f32 0.015625, %v853_v10  ;;  %v858_v13 = vmul.f32 %v4153_v8, %v4153_v8  ;;  %v809_v14 = vmul.f32 0.015625, %v806_v11  ;;  %v812_v15 = vmul.f32 %v4156_v9, %v4156_v9 }
 0x28a   : > { %v4163_v16 = vsub.f32 %v4146_v1, %v855_v12  ;;  %v860_v17 = vsel %vm800_vm0, %v858_v13, 0.0  ;;  %v4167_v18 = vsub.f32 %v4146_v1, %v809_v14  ;;  %v814_v20 = vsel %vm800_vm0, %v812_v15, 0.0  ;;  %v2383_v14 = vld [vmem:[#allocation17] ss:$0 sm:$0xff] }
 0x28b   : > { %861 = vadd.xlane.f32.xlu0 %v860_v17 }
 0x28c   : > { %v859_v19 = vmul.f32 %v4163_v16, %v4163_v16  ;;  %v813_v21 = vmul.f32 %v4167_v18, %v4167_v18 }
 0x28e   : > { %v863_v22 = vsel %vm800_vm0, %v859_v19, 0.0  ;;  %v817_v23 = vsel %vm800_vm0, %v813_v21, 0.0 }
 0x28f   : > { %864 = vadd.xlane.f32.xlu1 %v863_v22  ;;  %815 = vadd.xlane.f32.xlu0 %v814_v20 }
 0x293   : > { %818 = vadd.xlane.f32.xlu1 %v817_v23 }
 0x318   : > { %v862_v33 = vpop.xlane.xlu0 %861 }
 0x319   : > { %v866_v34 = vmul.f32 0.015625, %v862_v33 }
 0x31b   : > { %v868_v35 = vadd.f32 1e-05, %v866_v34 }
 0x31c   : > { %v816_v36 = vpop.xlane.xlu0 %815  ;;  %v865_v37 = vpop.xlane.xlu1 %864 }
 0x31d   : > { %2874 = vrsqrt.f32 %v868_v35  ;;  %v820_v38 = vmul.f32 0.015625, %v816_v36  ;;  %v867_v39 = vmul.f32 0.015625, %v865_v37 }
 0x31f   : > { %v822_v40 = vadd.f32 1e-05, %v820_v38  ;;  %v869_v41 = vadd.f32 1e-05, %v867_v39 }
 0x320   : > { %v819_v42 = vpop.xlane.xlu1 %818 }
 0x321   : > { %2876 = vrsqrt.f32 %v822_v40  ;;  %v821_v43 = vmul.f32 0.015625, %v819_v42 }
 0x322   : > { %2878 = vrsqrt.f32 %v869_v41 }
 0x323   : > { %v823_v44 = vadd.f32 1e-05, %v821_v43 }
 0x325   : > { %2880 = vrsqrt.f32 %v823_v44 }
 0x327   : > { %v2875_v45 = vpop.eup %2874 }
 0x328   : > { %v872_v46 = vmul.f32 %v2875_v45, %v4153_v8 }
 0x32a   : > { %v874_v52 = vmul.f32 %v2369_v47, %v872_v46 }
 0x32b   : > { %v2877_v48 = vpop.eup %2876 }
 0x32c   : > { %v2879_v49 = vpop.eup %2878  ;;  %v826_v50 = vmul.f32 %v2877_v48, %v4156_v9  ;;  %v876_v58 = vadd.f32 %v2370_v53, %v874_v52 }
 0x32d   : > { %v873_v51 = vmul.f32 %v2879_v49, %v4163_v16 }
 0x32e   : > { %v834_v57 = vmul.f32 %v2369_v47, %v826_v50 }
 0x32f   : > { %v2881_v54 = vpop.eup %2880  ;;  %v875_v55 = vmul.f32 %v2369_v47, %v873_v51 }
 0x330   : > { %v827_v56 = vmul.f32 %v2881_v54, %v4167_v18  ;;  %v842_v63 = vadd.f32 %v2370_v53, %v834_v57 }
 0x331   : > { %v877_v59 = vadd.f32 %v2370_v53, %v875_v55 }
 0x332   : > { %v835_v61 = vmul.f32 %v2369_v47, %v827_v56 }
 0x333   : > { %v878_v62 = vpack.c.bf16 %v877_v59, %v876_v58 }
 0x334   : > { %v843_v2 = vadd.f32 %v2370_v53, %v835_v61 }
 0x335   : > { %2505 = vmatmul.mubr.msk.bf16.vlgmr.msra.gmra.mrb[0].mxu1 %vm800_vm0, %v878_v62 }
 0x336   : > { %2509 = vmatpush3.bf16.msra.mxu1 %v2837_v60  ;;  %v844_v4 = vpack.c.bf16 %v843_v2, %v842_v63  ;;  %2516 = vmatprep.mubr.msk.bf16.mxu1 %vm3542_vm1, %v3541_v25 }
 0x337   : > { %2510 = vmatprep.subr.bf16.mxu1 %v3541_v25 }
 0x338   : > { %2529 = vmatmul.mubr.msk.bf16.vlgmr.msra.gmra.mrb[0].mxu0 %vm800_vm0, %v844_v4 }
 0x339   : > { %2546 = vmatprep.mubr.msk.bf16.mxu0 %vm3542_vm1, %v3541_v25 }
 0x33a   : > { %2511 = vmatpush3.bf16.msra.mxu1 %v2839_v3 }
 0x33b   : > { %2512 = vmatprep.subr.bf16.mxu1 %v3541_v25 }
 0x33e   : > { %2513 = vmatpush3.bf16.msra.mxu1 %v2840_v5 }
 0x33f   : > { %2514 = vmatprep.subr.bf16.mxu1 %v3541_v25 }
 0x342   : > { %2515 = vmatpush3.bf16.msra.mxu1 %v2841_v6 }
 0x343   : > { %2532 = vmatprep.subr.bf16.mxu1 %v3541_v25 }
 0x345   : > { %2517 = vmatmul.mubr.msk.bf16.vlgmr.msra.gmra.mrb[4].mxu1 %vm800_vm0, %v844_v4 }
 0x346   : > { %2534 = vmatprep.mubr.msk.bf16.mxu1 %vm3542_vm1, %v3541_v25 }
 0x408   : > { %v955_v8 = vpop.f32.mrb[0].mxu1 }
 0x409   : > { %v956_v9 = vadd.f32 %v2371_v7, %v955_v8  ;;  %v2506_v10 = vpop.f32.mrb[1].mxu1 }
 0x40a   : > { %v958_v11 = vpop.f32.mrb[2].mxu1 }
 0x40b   : > { %v959_v12 = vadd.f32 %v2371_v7, %v958_v11  ;;  %v2507_v13 = vpop.f32.mrb[3].mxu1  ;;  %v1122_v15 = vpop.f32.mrb[0].mxu0  ;;  %v962_v17 = vmul.f32 0.25, %v956_v9 }
 0x40c   : > { %v2530_v16 = vpop.f32.mrb[1].mxu0  ;;  %v1123_v20 = vadd.f32 %v2383_v14, %v1122_v15 }
 0x40d   : > { %v963_v18 = vmul.f32 0.25, %v959_v12  ;;  %v1125_v19 = vpop.f32.mrb[2].mxu0 }
 0x40e   : > { %v1126_v21 = vadd.f32 %v2383_v14, %v1125_v19  ;;  %v2531_v22 = vpop.f32.mrb[3].mxu0 }
 0x40f   : > { %v964_v23 = vpack.c.bf16 %v963_v18, %v962_v17 }
 0x410   : > { %v4207_v24 = vpack.c.bf16 %v1126_v21, %v1123_v20 }
 0x411   : > { %1248 = vrot.lane.b32.xlu1 %v964_v23, %s3543_s27 }
 0x418   : > { %v1041_v27 = vpop.f32.mrb[4].mxu1 }
 0x419   : > { %v2518_v28 = vpop.f32.mrb[5].mxu1  ;;  %v1042_v30 = vadd.f32 %v2377_v26, %v1041_v27 }
 0x41a   : > { %v1044_v29 = vpop.f32.mrb[6].mxu1 }
 0x41b   : > { %v1045_v31 = vadd.f32 %v2377_v26, %v1044_v29  ;;  %v2519_v32 = vpop.f32.mrb[7].mxu1 }
 0x41d   : > { %v1048_v33 = vpack.c.bf16 %v1045_v31, %v1042_v30 }
 0x41f   : > { %1380 = vrot.lane.b32.xlu1 %v1048_v33, %s3544_s22  ;;  %1251 = vrot.lane.b32.xlu0 %v1048_v33, %s3543_s27  ;;  %v1135_v34 = vsel %vm1130_vm2, %v1048_v33, 0 }
 0x420   : > { %2533 = vmatpush3.bf16.xpose.msra.mxu1 %v1135_v34 }
 0x421   : > { %2538 = vmatprep.subr.bf16.mxu1 %v3541_v25 }
 0x423   : > { %1378 = vrot.lane.b32.xlu1 %v964_v23, %s3544_s22  ;;  %1508 = vrot.lane.b32.xlu0 %v1048_v33, %s3545_s25 }
 0x427   : > { %1506 = vrot.lane.b32.xlu1 %v964_v23, %s3545_s25  ;;  %2535 = vmatmul.mubr.msk.bf16.vlgmr.msra.gmra.mrb[8].mxu1 %vm1130_vm2, %v964_v23 }
 0x428   : > { %2539 = vmatpush3.bf16.msra.mxu1 %v4207_v24  ;;  %2540 = vmatprep.mubr.msk.bf16.mxu1 %vm3542_vm1, %v3541_v25 }
 0x429   : > { %2550 = vmatprep.subr.bf16.mxu1 %v3541_v25 }
 0x483   : > { %v1249_v37 = vpop.permute.xlu1 %1248 }
 0x491   : > { %v1252_v35 = vpop.permute.xlu0 %1251  ;;  %v1381_v38 = vpop.permute.xlu1 %1380 }
 0x492   : > { %v1257_v36 = vsel %vm1130_vm2, %v1252_v35, 0  ;;  %v1386_v39 = vsel %vm1130_vm2, %v1381_v38, 0 }
 0x493   : > { %2545 = vmatpush3.bf16.xpose.msra.mxu0 %v1257_v36 }
 0x494   : > { %2556 = vmatprep.subr.bf16.mxu0 %v3541_v25 }
 0x495   : > { %v1509_v40 = vpop.permute.xlu0 %1508  ;;  %v1379_v41 = vpop.permute.xlu1 %1378 }
 0x496   : > { %v1514_v42 = vsel %vm1130_vm2, %v1509_v40, 0 }
 0x499   : > { %v1507_v43 = vpop.permute.xlu1 %1506 }
 0x49a   : > { %2547 = vmatmul.mubr.msk.bf16.vlgmr.msra.gmra.mrb[4].mxu0 %vm1130_vm2, %v1249_v37 }
 0x49b   : > { %2557 = vmatpush3.bf16.xpose.msra.mxu0 %v1386_v39  ;;  %2558 = vmatprep.mubr.msk.bf16.mxu0 %vm3542_vm1, %v3541_v25 }
 0x49c   : > { %2568 = vmatprep.subr.bf16.mxu0 %v3541_v25 }
 0x4a2   : > { %2559 = vmatmul.mubr.msk.bf16.vlgmr.msra.gmra.mrb[8].mxu0 %vm1130_vm2, %v1379_v41 }
 0x4a3   : > { %2569 = vmatpush3.bf16.xpose.msra.mxu0 %v1514_v42  ;;  %2570 = vmatprep.mubr.msk.bf16.mxu0 %vm3542_vm1, %v3541_v25 }
 0x4a4   : > { %2580 = vmatprep.subr.bf16.mxu0 %v3541_v25 }
 0x4aa   : > { %2571 = vmatmul.mubr.msk.bf16.vlgmr.msra.gmra.mrb[12].mxu0 %vm1130_vm2, %v1507_v43 }
 0x4ab   : > { %2588 = vmatprep.mubr.msk.bf16.mxu0 %vm3542_vm1, %v3541_v25 }
 0x4fa   : > { %v1171_v44 = vpop.f32.mrb[8].mxu1 }
 0x4fb   : > { %v2536_v45 = vpop.f32.mrb[9].mxu1  ;;  %v1178_v46 = vsel %vm1130_vm2, %v1171_v44, -inf }
 0x4fc   : > { %1179 = vmax.xlane.f32.xlu0 %v1178_v46  ;;  %v1174_v47 = vpop.f32.mrb[10].mxu1 }
 0x4fd   : > { %v2537_v48 = vpop.f32.mrb[11].mxu1  ;;  %v1181_v49 = vsel %vm1130_vm2, %v1174_v47, -inf }
 0x4fe   : > { %1182 = vmax.xlane.f32.xlu1 %v1181_v49 }
 0x56d   : > { %v1293_v50 = vpop.f32.mrb[4].mxu0 }
 0x56e   : > { %v2548_v51 = vpop.f32.mrb[5].mxu0  ;;  %v1300_v52 = vsel %vm1130_vm2, %v1293_v50, -inf }
 0x56f   : > { %1301 = vmax.xlane.f32.xlu0 %v1300_v52  ;;  %v1296_v53 = vpop.f32.mrb[6].mxu0 }
 0x570   : > { %v2549_v54 = vpop.f32.mrb[7].mxu0  ;;  %v1303_v55 = vsel %vm1130_vm2, %v1296_v53, -inf }
 0x573   : > { %1304 = vmax.xlane.f32.xlu0 %v1303_v55 }
 0x575   : > { %v1422_v56 = vpop.f32.mrb[8].mxu0 }
 0x576   : > { %v2560_v57 = vpop.f32.mrb[9].mxu0  ;;  %v1429_v58 = vsel %vm1130_vm2, %v1422_v56, -inf }
 0x577   : > { %1430 = vmax.xlane.f32.xlu0 %v1429_v58  ;;  %v1425_v59 = vpop.f32.mrb[10].mxu0 }
 0x578   : > { %v2561_v60 = vpop.f32.mrb[11].mxu0  ;;  %v1432_v61 = vsel %vm1130_vm2, %v1425_v59, -inf }
 0x579   : > { %1433 = vmax.xlane.f32.xlu1 %v1432_v61 }
 0x57d   : > { %v1550_v62 = vpop.f32.mrb[12].mxu0 }
 0x57e   : > { %v2572_v63 = vpop.f32.mrb[13].mxu0  ;;  %v1557_v2 = vsel %vm1130_vm2, %v1550_v62, -inf }
 0x57f   : > { %1558 = vmax.xlane.f32.xlu0 %v1557_v2  ;;  %v4244_v3 = vpop.f32.mrb[14].mxu0 }
 0x580   : > { %v2573_v4 = vpop.f32.mrb[15].mxu0  ;;  %v1560_v5 = vsel %vm1130_vm2, %v4244_v3, -inf }
 0x581   : > { %1561 = vmax.xlane.f32.xlu1 %v1560_v5 }
 0x589   : > { %v1180_v6 = vpop.xlane.xlu0 %1179 }
 0x58a   : > { %v1184_v7 = vsub.f32 %v1171_v44, %v1180_v6 }
 0x58b   : > { %v1183_v8 = vpop.xlane.xlu1 %1182 }
 0x58c   : > { %v1186_v9 = vmul.f32 1.442695, %v1184_v7  ;;  %v1185_v10 = vsub.f32 %v1174_v47, %v1183_v8 }
 0x58e   : > { %2882 = vpow2.f32 %v1186_v9  ;;  %v1188_v11 = vmul.f32 1.442695, %v1185_v10 }
 0x590   : > { %2884 = vpow2.f32 %v1188_v11 }
 0x598   : > { %v2883_v12 = vpop.eup %2882 }
 0x599   : > { %v1190_v13 = vsel %vm1130_vm2, %v2883_v12, 0.0 }
 0x59a   : > { %v2885_v14 = vpop.eup %2884  ;;  %1191 = vadd.xlane.f32.xlu0 %v1190_v13 }
 0x59b   : > { %v1193_v15 = vsel %vm1130_vm2, %v2885_v14, 0.0 }
 0x59c   : > { %1194 = vadd.xlane.f32.xlu1 %v1193_v15 }
 0x5fc   : > { %v1302_v16 = vpop.xlane.xlu0 %1301 }
 0x5fd   : > { %v1306_v17 = vsub.f32 %v1293_v50, %v1302_v16 }
 0x5ff   : > { %v1308_v18 = vmul.f32 1.442695, %v1306_v17 }
 0x600   : > { %v1305_v19 = vpop.xlane.xlu0 %1304 }
 0x601   : > { %2886 = vpow2.f32 %v1308_v18  ;;  %v1307_v20 = vsub.f32 %v1296_v53, %v1305_v19 }
 0x603   : > { %v1310_v21 = vmul.f32 1.442695, %v1307_v20 }
 0x604   : > { %v1431_v22 = vpop.xlane.xlu0 %1430 }
 0x605   : > { %2888 = vpow2.f32 %v1310_v21  ;;  %v1435_v23 = vsub.f32 %v1422_v56, %v1431_v22  ;;  %v2842_v22 = vld [vmem:[#allocation18] sm:$0xff]  }
 0x606   : > { %v1434_v26 = vpop.xlane.xlu1 %1433  ;;  %2581 = vmatpush3.bf16.msra.mxu0 %v2842_v22  ;;  %v2403_v22 = vld [vmem:[#allocation21] ss:$0 sm:$0xff] }
 0x607   : > { %v1437_v27 = vmul.f32 1.442695, %v1435_v23  ;;  %v1436_v28 = vsub.f32 %v1425_v59, %v1434_v26  ;;  %2582 = vmatprep.subr.bf16.mxu0 %v3541_v25 }
 0x609   : > { %2890 = vpow2.f32 %v1437_v27  ;;  %v1439_v29 = vmul.f32 1.442695, %v1436_v28  ;;  %v2843_v27 = vld [vmem:[#allocation18 + $0x8] sm:$0xff]  }
 0x60a   : > { %2583 = vmatpush3.bf16.msra.mxu0 %v2843_v27 }
 0x60b   : > { %v2887_v30 = vpop.eup %2886  ;;  %2892 = vpow2.f32 %v1439_v29  ;;  %2584 = vmatprep.subr.bf16.mxu0 %v3541_v25 }
 0x60c   : > { %v1559_v31 = vpop.xlane.xlu0 %1558  ;;  %v1312_v32 = vsel %vm1130_vm2, %v2887_v30, 0.0 }
 0x60d   : > { %v1563_v33 = vsub.f32 %v1550_v62, %v1559_v31  ;;  %1313 = vadd.xlane.f32.xlu0 %v1312_v32 }
 0x60e   : > { %v1562_v43 = vpop.xlane.xlu1 %1561 }
 0x60f   : > { %v2889_v34 = vpop.eup %2888  ;;  %v1565_v35 = vmul.f32 1.442695, %v1563_v33  ;;  %v1564_v50 = vsub.f32 %v4244_v3, %v1562_v43 }
 0x610   : > { %v1315_v36 = vsel %vm1130_vm2, %v2889_v34, 0.0 }
 0x611   : > { %2894 = vpow2.f32 %v1565_v35  ;;  %1316 = vadd.xlane.f32.xlu1 %v1315_v36  ;;  %v1567_v52 = vmul.f32 1.442695, %v1564_v50  ;;  %v2844_v35 = vld [vmem:[#allocation18 + $0x10] sm:$0xff]   ;;  %v2845_v36 = vld [vmem:[#allocation18 + $0x18] sm:$0xff]  }
 0x612   : > { %2585 = vmatpush3.bf16.msra.mxu0 %v2844_v35  ;;  %v2864_v35 = vld [vmem:[#allocation27 + $0x58] sm:$0xff]  }
 0x613   : > { %v2891_v37 = vpop.eup %2890  ;;  %2586 = vmatprep.subr.bf16.mxu0 %v3541_v25 }
 0x614   : > { %v1441_v38 = vsel %vm1130_vm2, %v2891_v37, 0.0 }
 0x615   : > { %v2893_v39 = vpop.eup %2892  ;;  %1442 = vadd.xlane.f32.xlu0 %v1441_v38 }
 0x616   : > { %v1444_v40 = vsel %vm1130_vm2, %v2893_v39, 0.0  ;;  %2587 = vmatpush3.bf16.msra.mxu0 %v2845_v36  ;;  %v2865_v36 = vld [vmem:[#allocation27 + $0x18] sm:$0xff]  }
 0x617   : > { %1445 = vadd.xlane.f32.xlu1 %v1444_v40 }
 0x61b   : > { %v2895_v41 = vpop.eup %2894 }
 0x61c   : > { %v1569_v42 = vsel %vm1130_vm2, %v2895_v41, 0.0 }
 0x61d   : > { %1570 = vadd.xlane.f32.xlu0 %v1569_v42 }
 0x627   : > { %v1192_v44 = vpop.xlane.xlu0 %1191 }
 0x628   : > { %2896 = vrcp.f32 %v1192_v44  ;;  %1452 = vrot.lane.b32.xlu1 %v4207_v24, %s3544_s22  ;;  %s3404_s22 = scalar_lea.vmem %s4304_s18, 256 }
 0x629   : > { %v1195_v45 = vpop.xlane.xlu1 %1194  ;;  %p3405_p11 = scmp.ne.s32.totalorder %s4304_s18, %s3404_s22 }
 0x62a   : > { %2898 = vrcp.f32 %v1195_v45 }
 0x62b   : > { %2900 = vpow2.f32 %v1567_v52  ;;  %p3406_p5 = pnand %p3405_p11, %p4446_p0 }
 0x62d   : > { %p3407_p1 = pneg %p3406_p5 }
 0x632   : > { %v2897_v46 = vpop.eup %2896 }
 0x633   : > { %1324 = vrot.lane.b32.xlu0 %v4207_v24, %s3543_s27  ;;  %v1198_v48 = vmul.f32 %v2897_v46, %v2883_v12  ;;  %s4302_s27 = scalar_lea.hbm %s4445_s2, %s2437_s29 }
 0x634   : > { %v2899_v47 = vpop.eup %2898 }
 0x635   : > { %v1199_v49 = vmul.f32 %v2899_v47, %v2885_v14  ;;  %v2901_v53 = vpop.eup %2900 }
 0x636   : > { %v1572_v54 = vsel %vm1130_vm2, %v2901_v53, 0.0 }
 0x637   : > { %v1200_v51 = vpack.c.bf16 %v1199_v49, %v1198_v48 }
 0x639   : > { %2541 = vmatmul.mubr.msk.bf16.vlgmr.msra.gmra.mrb[12].mxu1 %vm1130_vm2, %v1200_v51 }
 0x63a   : > { %2552 = vmatprep.mubr.msk.bf16.mxu1 %vm3542_vm1, %v3541_v25 }
 0x64c   : > { %1573 = vadd.xlane.f32.xlu1 %v1572_v54 }
 0x65d   : > { %1580 = vrot.lane.b32.xlu1 %v4207_v24, %s3545_s25  ;;  %s3550_s25 = smov [#allocation30]  }
 0x69a   : > { %v1314_v55 = vpop.xlane.xlu0 %1313 }
 0x69e   : > { %v1317_v56 = vpop.xlane.xlu1 %1316 }
 0x69f   : > { %2902 = vrcp.f32 %v1317_v56 }
 0x6a0   : > { %2904 = vrcp.f32 %v1314_v55 }
 0x6a2   : > { %v1443_v58 = vpop.xlane.xlu0 %1442 }
 0x6a4   : > { %v1446_v57 = vpop.xlane.xlu1 %1445 }
 0x6a5   : > { %2906 = vrcp.f32 %v1446_v57 }
 0x6a6   : > { %2908 = vrcp.f32 %v1443_v58 }
 0x6a8   : > { %v1453_v24 = vpop.permute.xlu1 %1452 }
 0x6a9   : > { %v2903_v59 = vpop.eup %2902 }
 0x6aa   : > { %v1571_v60 = vpop.xlane.xlu0 %1570  ;;  %v2905_v61 = vpop.eup %2904  ;;  %v1321_v62 = vmul.f32 %v2903_v59, %v2889_v34 }
 0x6ab   : > { %v1320_v63 = vmul.f32 %v2905_v61, %v2887_v30  ;;  %2910 = vrcp.f32 %v1571_v60 }
 0x6ad   : > { %v1322_v3 = vpack.c.bf16 %v1321_v62, %v1320_v63 }
 0x6ae   : > { %v1325_v2 = vpop.permute.xlu0 %1324 }
 0x6af   : > { %2551 = vmatpush3.bf16.msra.mxu1 %v1325_v2  ;;  %v2907_v4 = vpop.eup %2906  ;;  %v2848_v2 = vld [vmem:[#allocation24 + $0x4] ss:$8 sps:$4 sm:$0xff]  }
 0x6b0   : > { %2562 = vmatprep.subr.bf16.mxu1 %v3541_v25  ;;  %v2909_v5 = vpop.eup %2908  ;;  %v1450_v6 = vmul.f32 %v2907_v4, %v2893_v39  ;;  %v2851_v4 = vld [vmem:[#allocation24 + $0x14] ss:$8 sps:$4 sm:$0xff]  }
 0x6b1   : > { %v1449_v7 = vmul.f32 %v2909_v5, %v2891_v37  ;;  %v2854_v5 = vld [vmem:[#allocation24 + $0x24] ss:$8 sps:$4 sm:$0xff]  }
 0x6b2   : > { %2553 = vmatmul.mubr.msk.bf16.vlgmr.msra.gmra.mrb[16].mxu1 %vm1130_vm2, %v1322_v3  ;;  %v2846_v3 = vld [vmem:[#allocation24] ss:$8 sps:$4 sm:$0xff]  }
 0x6b3   : > { %2563 = vmatpush3.bf16.msra.mxu1 %v1453_v24  ;;  %2564 = vmatprep.mubr.msk.bf16.mxu1 %vm3542_vm1, %v3541_v25  ;;  %v1451_v8 = vpack.c.bf16 %v1450_v6, %v1449_v7  ;;  %v2849_v24 = vld [vmem:[#allocation24 + $0x10] ss:$8 sps:$4 sm:$0xff]   ;;  %v2852_v6 = vld [vmem:[#allocation24 + $0x20] ss:$8 sps:$4 sm:$0xff]  }
 0x6b4   : > { %2574 = vmatprep.subr.bf16.mxu1 %v3541_v25  ;;  %v2855_v7 = vld [vmem:[#allocation24 + $0x30] ss:$8 sps:$4 sm:$0xff]  }
 0x6b5   : > { %v2911_v11 = vpop.eup %2910 }
 0x6b6   : > { %v1577_v13 = vmul.f32 %v2911_v11, %v2895_v41  ;;  %v2859_v11 = vld [vmem:[#allocation27] sm:$0xff]  }
 0x6ba   : > { %2565 = vmatmul.mubr.msk.bf16.vlgmr.msra.gmra.mrb[20].mxu1 %vm1130_vm2, %v1451_v8  ;;  %v2857_v8 = vld [vmem:[#allocation24 + $0x34] ss:$8 sps:$4 sm:$0xff]  }
 0x6bb   : > { %2576 = vmatprep.mubr.msk.bf16.mxu1 %vm3542_vm1, %v3541_v25  ;;  %v2397_v25 = vld [vmem:[#allocation20] ss:$0 sm:$0xff] }
 0x6d9   : > { %v1574_v9 = vpop.xlane.xlu1 %1573 }
 0x6da   : > { %2912 = vrcp.f32 %v1574_v9  ;;  %v3549_v9 = vmov 0  }
 0x6dd   : > { %v1581_v10 = vpop.permute.xlu1 %1580 }
 0x6de   : > { %2575 = vmatpush3.bf16.msra.mxu1 %v1581_v10  ;;  %v2858_v10 = vld [vmem:[#allocation27 + $0x40] sm:$0xff]  }
 0x6df   : > { %1828 = vmatprep.subr.bf16.mxu1 %v2848_v2  ;;  %2474 = vmatprep.subr.bf16.mxu0 %v2858_v10 }
 0x6e4   : > { %v2913_v12 = vpop.eup %2912 }
 0x6e5   : > { %v1578_v14 = vmul.f32 %v2913_v12, %v2901_v53  ;;  %v2860_v12 = vld [vmem:[#allocation27 + $0x48] sm:$0xff]  }
 0x6e7   : > { %v1579_v15 = vpack.c.bf16 %v1578_v14, %v1577_v13  ;;  %v2861_v13 = vld [vmem:[#allocation27 + $0x8] sm:$0xff]  }
 0x6e9   : > { %2577 = vmatmul.mubr.msk.bf16.vlgmr.msra.gmra.mrb[24].mxu1 %vm1130_vm2, %v1579_v15 }
 0x6ea   : > { %1829 = vmatpush1.bf16.msra.mxu1 %v2846_v3  ;;  %1860 = vmatprep.mubr.bf16.mxu1 %v3549_v9 }
 0x6eb   : > { %1830 = vmatprep.subr.bf16.mxu1 %v2851_v4 }
 0x6ee   : > { %1831 = vmatpush1.bf16.msra.mxu1 %v2849_v24 }
 0x6ef   : > { %1832 = vmatprep.subr.bf16.mxu1 %v2854_v5 }
 0x6f2   : > { %1833 = vmatpush1.bf16.msra.mxu1 %v2852_v6 }
 0x6f3   : > { %1834 = vmatprep.subr.bf16.mxu1 %v2857_v8 }
 0x6f6   : > { %1835 = vmatpush1.bf16.msra.mxu1 %v2855_v7 }
 0x70c   : > { %v1238_v16 = vpop.f32.mrb[12].mxu1 }
 0x70d   : > { %v2542_v17 = vpop.f32.mrb[13].mxu1 }
 0x70e   : > { %v1241_v18 = vpop.f32.mrb[14].mxu1 }
 0x70f   : > { %v1245_v19 = vpack.c.bf16 %v1241_v18, %v1238_v16  ;;  %v2543_v20 = vpop.f32.mrb[15].mxu1 }
 0x711   : > { %1246 = vst.msk [vmem:[#allocation2] sm:$0xff] %vm1130_vm2, %v1245_v19 }
 0x785   : > { %v1364_v21 = vpop.f32.mrb[16].mxu1 }
 0x786   : > { %v2554_v23 = vpop.f32.mrb[17].mxu1 }
 0x787   : > { %v1367_v26 = vpop.f32.mrb[18].mxu1 }
 0x788   : > { %v1371_v28 = vpack.c.bf16 %v1367_v26, %v1364_v21  ;;  %v2555_v29 = vpop.f32.mrb[19].mxu1 }
 0x78a   : > { %1373 = vrot.lane.b32.xlu1 %v1371_v28, %s3546_s21  ;;  %v2404_v28 = vld [vmem:[#allocation23] ss:$0 sm:$0xff]  ;;  %s3408_s21 = sshll.u32 %s3550_s25, 4  ;;  %s3409_s21 = int_to_ptr.vmem [resolvable:$false] %s3408_s21 }
 0x78b   : > { %p3411_p10 = scmp.lt.s32.totalorder %s4304_s18, %s3409_s21 }
 0x78d   : > { %v1492_v30 = vpop.f32.mrb[20].mxu1 }
 0x78e   : > { %v2566_v31 = vpop.f32.mrb[21].mxu1 }
 0x78f   : > { %v1495_v32 = vpop.f32.mrb[22].mxu1 }
 0x790   : > { %v1499_v33 = vpack.c.bf16 %v1495_v32, %v1492_v30  ;;  %v2567_v34 = vpop.f32.mrb[23].mxu1 }
 0x791   : > { %v2863_v34 = vld [vmem:[#allocation27 + $0x10] sm:$0xff]  }
 0x792   : > { %1501 = vrot.lane.b32.xlu0 %v1499_v33, %s3547_s17  ;;  %v2862_v33 = vld [vmem:[#allocation27 + $0x50] sm:$0xff]   ;;  %s3410_s17 = scalar_lea.vmem %s3409_s21, 512 }
 0x793   : > { %p3412_p13 = scmp.lt.s32.totalorder %s3410_s17, %s3404_s22 }
 0x795   : > { %p3413_p2 = por %p3412_p13, %p3411_p10 }
 0x797   : > { %p3414_p8 = pnand %p3413_p2, %p3407_p1 }
 0x7bc   : > { %v1620_v37 = vpop.f32.mrb[24].mxu1 }
 0x7bd   : > { %v2578_v38 = vpop.f32.mrb[25].mxu1 }
 0x7be   : > { %v1623_v39 = vpop.f32.mrb[26].mxu1  ;;  %v2867_v38 = vld [vmem:[#allocation27 + $0x20] sm:$0xff]  }
 0x7bf   : > { %v1627_v40 = vpack.c.bf16 %v1623_v39, %v1620_v37  ;;  %v2579_v41 = vpop.f32.mrb[27].mxu1  ;;  %v2866_v37 = vld [vmem:[#allocation27 + $0x60] sm:$0xff]   ;;  %v2868_v39 = vld [vmem:[#allocation27 + $0x68] sm:$0xff]  }
 0x7c0   : > { %v2870_v41 = vld [vmem:[#allocation27 + $0x70] sm:$0xff]  }
 0x7c1   : > { %1629 = vrot.lane.b32.xlu1 %v1627_v40, %s3548_s24  ;;  %v2869_v40 = vld [vmem:[#allocation27 + $0x28] sm:$0xff]  }
 0x7fc   : > { %v1374_v42 = vpop.permute.xlu1 %1373 }
 0x7fd   : > { %1377 = vst.msk [vmem:[#allocation2] sm:$0xff] %vm1376_vm3, %v1374_v42  ;;  %v2871_v42 = vld [vmem:[#allocation27 + $0x30] sm:$0xff]  }
 0x804   : > { %v1502_v43 = vpop.permute.xlu0 %1501 }
 0x805   : > { %1505 = vst.msk [vmem:[#allocation2] sm:$0xff] %vm1504_vm4, %v1502_v43  ;;  %v2872_v43 = vld [vmem:[#allocation27 + $0x78] sm:$0xff]  }
 0x833   : > { %v1630_v44 = vpop.permute.xlu1 %1629 }
 0x834   : > { %1633 = vst.msk [vmem:[#allocation2] sm:$0xff] %vm1632_vm5, %v1630_v44  ;;  %v2873_v44 = vld [vmem:[#allocation27 + $0x38] sm:$0xff]  }
 0x83b   : > { %v1634_v45 = vld [vmem:[#allocation2] sm:$0xff] }
 0x83c   : > { %2589 = vmatmul.mubr.msk.bf16.vlgmr.msra.gmra.mrb[16].mxu0 %vm800_vm0, %v1634_v45  ;;  %v1775_v45 = vlaneseq }
 0x83d   : > { %2475 = vmatpush3.bf16.msra.mxu0 %v2859_v11 }
 0x83e   : > { %2476 = vmatprep.subr.bf16.mxu0 %v2860_v12 }
 0x841   : > { %2477 = vmatpush3.bf16.msra.mxu0 %v2861_v13 }
 0x842   : > { %2478 = vmatprep.subr.bf16.mxu0 %v2862_v33 }
 0x845   : > { %2479 = vmatpush3.bf16.msra.mxu0 %v2863_v34 }
 0x846   : > { %2480 = vmatprep.subr.bf16.mxu0 %v2864_v35 }
 0x849   : > { %2481 = vmatpush3.bf16.msra.mxu0 %v2865_v36 }
 0x84a   : > { %2482 = vmatprep.subr.bf16.mxu0 %v2866_v37 }
 0x84d   : > { %2483 = vmatpush3.bf16.msra.mxu0 %v2867_v38 }
 0x84e   : > { %2484 = vmatprep.subr.bf16.mxu0 %v2868_v39 }
 0x851   : > { %2485 = vmatpush3.bf16.msra.mxu0 %v2869_v40 }
 0x852   : > { %2486 = vmatprep.subr.bf16.mxu0 %v2870_v41 }
 0x855   : > { %2487 = vmatpush3.bf16.msra.mxu0 %v2871_v42 }
 0x856   : > { %2488 = vmatprep.subr.bf16.mxu0 %v2872_v43 }
 0x859   : > { %2489 = vmatpush3.bf16.msra.mxu0 %v2873_v44 }
 0x90f   : > { %v1711_v46 = vpop.f32.mrb[16].mxu0 }
 0x910   : > { %v1712_v47 = vadd.f32 %v2397_v25, %v1711_v46  ;;  %v2590_v48 = vpop.f32.mrb[17].mxu0 }
 0x911   : > { %v1714_v49 = vpop.f32.mrb[18].mxu0 }
 0x912   : > { %v4281_v50 = vadd.f32 %v1712_v47, %v4144_v0  ;;  %v1715_v51 = vadd.f32 %v2397_v25, %v1714_v49  ;;  %v2591_v52 = vpop.f32.mrb[19].mxu0  ;;  %v1776_v25 = vshrl.u32 %v1775_v45, 7  ;;  %v1773_v47 = vld [vmem:[#allocation26] sm:$0x3] }
 0x914   : > { %v4284_v53 = vadd.f32 %v1715_v51, %v4146_v1  ;;  %v1722_v54 = vsel %vm800_vm0, %v4281_v50, 0.0  ;;  %v1777_v46 = vsub.s32 0, %v1776_v25  ;;  %v1781_v48 = vsub.s32 1, %v1776_v25 }
 0x915   : > { %1723 = vadd.xlane.f32.xlu0 %v1722_v54 }
 0x916   : > { %v1725_v55 = vsel %vm800_vm0, %v4284_v53, 0.0  ;;  %v1778_v49 = vrot.slane %v1773_v47, %v1777_v46  ;;  %v1782_v51 = vrot.slane %v1773_v47, %v1781_v48 }
 0x917   : > { %1726 = vadd.xlane.f32.xlu1 %v1725_v55 }
 0x9a2   : > { %v1724_v56 = vpop.xlane.xlu0 %1723 }
 0x9a3   : > { %v1728_v57 = vmul.f32 0.015625, %v1724_v56 }
 0x9a4   : > { %v1727_v58 = vpop.xlane.xlu1 %1726 }
 0x9a5   : > { %v1730_v59 = vsub.f32 %v4281_v50, %v1728_v57  ;;  %v1729_v0 = vmul.f32 0.015625, %v1727_v58 }
 0x9a7   : > { %v1731_v60 = vsub.f32 %v4284_v53, %v1729_v0  ;;  %v1732_v61 = vmul.f32 %v1730_v59, %v1730_v59 }
 0x9a9   : > { %v1734_v1 = vsel %vm800_vm0, %v1732_v61, 0.0  ;;  %v1733_v62 = vmul.f32 %v1731_v60, %v1731_v60 }
 0x9aa   : > { %1735 = vadd.xlane.f32.xlu0 %v1734_v1 }
 0x9ab   : > { %v1737_v63 = vsel %vm800_vm0, %v1733_v62, 0.0 }
 0x9ae   : > { %1738 = vadd.xlane.f32.xlu0 %v1737_v63 }
 0xa37   : > { %v1736_v14 = vpop.xlane.xlu0 %1735 }
 0xa38   : > { %v1740_v15 = vmul.f32 0.015625, %v1736_v14 }
 0xa3a   : > { %v1742_v16 = vadd.f32 1e-05, %v1740_v15 }
 0xa3b   : > { %v1739_v17 = vpop.xlane.xlu0 %1738 }
 0xa3c   : > { %2914 = vrsqrt.f32 %v1742_v16  ;;  %v1741_v18 = vmul.f32 0.015625, %v1739_v17 }
 0xa3e   : > { %v1743_v19 = vadd.f32 1e-05, %v1741_v18 }
 0xa40   : > { %2916 = vrsqrt.f32 %v1743_v19  ;;  %v2414_v19 = vld [vmem:[#allocation29] ss:$0 sm:$0xff] }
 0xa46   : > { %v2915_v20 = vpop.eup %2914 }
 0xa47   : > { %v1746_v21 = vmul.f32 %v2915_v20, %v1730_v59 }
 0xa49   : > { %v1754_v26 = vmul.f32 %v2403_v22, %v1746_v21 }
 0xa4a   : > { %v2917_v23 = vpop.eup %2916 }
 0xa4b   : > { %v1747_v27 = vmul.f32 %v2917_v23, %v1731_v60  ;;  %v1762_v30 = vadd.f32 %v2404_v28, %v1754_v26 }
 0xa4d   : > { %v1755_v29 = vmul.f32 %v2403_v22, %v1747_v27 }
 0xa4f   : > { %v1763_v31 = vadd.f32 %v2404_v28, %v1755_v29 }
 0xa51   : > { %v1764_v32 = vpack.c.bf16 %v1763_v31, %v1762_v30 }
 0xa53   : > { %2413 = vmatmul.mubr.msk.bf16.vlgmr.msra.gmra.mrb[28].mxu1 %vm800_vm0, %v1764_v32 }
 0xb26   : > { %v1862_v52 = vpop.f32.mrb[28].mxu1 }
 0xb27   : > { %v1863_v54 = vadd.f32 %v1862_v52, %v1778_v49  ;;  %v1864_v55 = vpop.f32.mrb[29].mxu1 }
 0xb28   : > { %v1865_v56 = vadd.f32 %v1864_v55, %v1782_v51  ;;  %v1866_v57 = vpop.f32.mrb[30].mxu1 }
 0xb29   : > { %v1875_v58 = vmul.f32 0.70710677, %v1863_v54  ;;  %v1867_v59 = vadd.f32 %v1866_v57, %v1778_v49  ;;  %v1868_v0 = vpop.f32.mrb[31].mxu1  ;;  %v1871_v6 = vmul.f32 0.5, %v1863_v54 }
 0xb2a   : > { %v1876_v60 = vmul.f32 0.70710677, %v1865_v56  ;;  %v1869_v61 = vadd.f32 %v1868_v0, %v1782_v51  ;;  %v1872_v9 = vmul.f32 0.5, %v1865_v56 }
 0xb2b   : > { %2918 = verf.f32 %v1875_v58  ;;  %v1877_v1 = vmul.f32 0.70710677, %v1867_v59  ;;  %v1873_v7 = vmul.f32 0.5, %v1867_v59 }
 0xb2c   : > { %2920 = verf.f32 %v1876_v60  ;;  %v1878_v62 = vmul.f32 0.70710677, %v1869_v61  ;;  %v1874_v10 = vmul.f32 0.5, %v1869_v61 }
 0xb2d   : > { %2922 = verf.f32 %v1877_v1 }
 0xb2e   : > { %2924 = verf.f32 %v1878_v62 }
 0xb35   : > { %v2919_v63 = vpop.eup %2918 }
 0xb36   : > { %v2921_v2 = vpop.eup %2920  ;;  %v1883_v3 = vadd.f32 1.0, %v2919_v63 }
 0xb37   : > { %v2923_v4 = vpop.eup %2922  ;;  %v1884_v24 = vadd.f32 1.0, %v2921_v2 }
 0xb38   : > { %v2925_v5 = vpop.eup %2924  ;;  %v1885_v8 = vadd.f32 1.0, %v2923_v4  ;;  %v1887_v12 = vmul.f32 %v1883_v3, %v1871_v6 }
 0xb39   : > { %v1886_v11 = vadd.f32 1.0, %v2925_v5  ;;  %v1888_v14 = vmul.f32 %v1884_v24, %v1872_v9 }
 0xb3a   : > { %v1889_v13 = vmul.f32 %v1885_v8, %v1873_v7 }
 0xb3b   : > { %v1890_v15 = vmul.f32 %v1886_v11, %v1874_v10 }
 0xb3c   : > { %v1891_v16 = vpack.c.bf16 %v1889_v13, %v1887_v12 }
 0xb3d   : > { %v1892_v17 = vpack.c.bf16 %v1890_v15, %v1888_v14 }
 0xb3f   : > { %2060 = vmatprep.mubr.bf16.mxu0 %v1892_v17 }
 0xb40   : > { %2061 = vmatmul.mubr.bf16.vlgmr.msra.gmra.mrb[20].mxu0 %v1891_v16 }
 0xc13   : > { %v2490_v18 = vpop.f32.mrb[20].mxu0 }
 0xc14   : > { %v2491_v20 = vpop.f32.mrb[21].mxu0 }
 0xc15   : > { %v2492_v21 = vadd.f32 %v2491_v20, %v2490_v18  ;;  %v2493_v22 = vpop.f32.mrb[22].mxu0 }
 0xc16   : > { %v2494_v23 = vpop.f32.mrb[23].mxu0 }
 0xc17   : > { %v2063_v26 = vadd.f32 %v2492_v21, %v2414_v19  ;;  %v2495_v27 = vadd.f32 %v2494_v23, %v2493_v22 }
 0xc19   : > { %v2069_v28 = vadd.f32 %v2063_v26, %v4281_v50  ;;  %v2066_v29 = vadd.f32 %v2495_v27, %v2414_v19 }
 0xc1b   : > { %2071 = vst.msk [vmem:[%s792_s26] sm:$0xff] %vm800_vm0, %v2069_v28  ;;  %v2070_v30 = vadd.f32 %v2066_v29, %v4284_v53 }
 0xc1d   : > { %2072 = vst.msk [vmem:[%s792_s26 + $0x8] sm:$0xff] %vm800_vm0, %v2070_v30 }
 0xc1e   : > { %3417 = shalt.err (!%p3414_p8)
}
 0xc1f   : > { %s3418_s24 = scalar_lea.hbm %s4302_s27, 256  ;;  %s3422_s26 = scalar_lea.hbm %s4445_s2, 512 }
 0xc20   : > { %p3419_p9 = scmp.ne.s32.totalorder %s4302_s27, %s3418_s24  ;;  %p3423_p3 = scmp.lt.u32.totalorder %s4302_s27, %s4445_s2 }
 0xc21   : > { %p3424_p7 = scmp.lt.u32.totalorder %s3422_s26, %s3418_s24  ;;  %p3426_p11 = scmp.lt.u32.totalorder %s3418_s24, %s4302_s27 }
 0xc22   : > { %p3420_p4 = pnand %p3419_p9, %p4446_p0 }
 0xc23   : > { %p3425_p12 = por %p3424_p7, %p3423_p3 }
 0xc24   : > { %p3421_p6 = pneg %p3420_p4 }
 0xc25   : > { %p3427_p5 = por %p3426_p11, %p3425_p12 }
 0xc27   : > { %p3428_p1 = pnand %p3427_p5, %p3421_p6 }
 0xc29   : > { %3431 = shalt.err (!%p3428_p1)
}
 0xc2a   : > { %s3551_s22 = smov 128   ;;  %s3552_s25 = smov 8  }
 0xc2b   : > { %2658 = dma.vmem_to_hbm [thread:$0]  (%p4446_p0), %s4304_s18, 256, %s4302_s27, %s2074_s1, %s3551_s22, %s3551_s22, %s3552_s25  }
 0xc2c PF: > { %s4447_s21 = sld [smem:[#allocation41_spill]]  ;;  %s4448_s17 = sld [smem:[#allocation46_spill]] }
 0xc2d   : > { %p4449_p10 = scmp.ne.s32.totalorder %s4433_s3, 0 }
 0xc32   : > { %s2104_s30 = sand.u32 1, %s4447_s21   ;;  %p4450_p13 = scmp.ge.s32.totalorder %s4448_s17, 2 }
 0xc33   : > { %s2105_s24 = scalar_lea.sflag [#allocation5], %s2104_s30 }
 0xc34   : > { %p2714_p2 = pnand %p4450_p13, %p4449_p10 }
 0xc36   : > { %3493 = dma.done.wait (!%p2714_p2), %s2105_s24, 256  }
 0xc37   : > { %3495 = vsyncadd (!%p2714_p2), %s2105_s24, 4294967040  ;;  %s41_s29 = sadd.s32 1, %s4448_s17   ;;  %s4451_s24 = sld [smem:[#allocation42_spill]] }
 0xc38   : > { %p38_p8 = scmp.ge.s32.totalorder %s41_s29, 4   ;;  %s4452_s25 = sld [smem:[#allocation43_spill]] }
 0xc39   : > { %s4453_s27 = sld [smem:[#allocation45_spill]]  ;;  %s4454_s26 = smov %s4046_s5 }
 0xc3a   : > { %s4455_s28 = smov %s4457_s23  ;;  %40 = sbr.rel (!%p38_p8) target bundleno = 22 (0x16), region = 198 }
 0xc41   :  { %2110 = vsyncpa [#allocation4], 1 }
 0xc42   :  { %2112 = vsyncpa [#allocation4 + $0x1], 1 }
 0xc43   :  { %2113 = vsyncpa [#allocation7], 1 }
 0xc44   :  { %2114 = vsyncpa [#allocation10], 1 }
 0xc45   :  { %2115 = vsyncpa [#allocation13], 1 }
 0xc46   :  { %2116 = vsyncpa [#allocation16], 1 }
 0xc47   :  { %2117 = vsyncpa [#allocation19], 1 }
 0xc48   :  { %2118 = vsyncpa [#allocation22], 1 }
 0xc49   :  { %2119 = vsyncpa [#allocation25], 1 }
 0xc4a   :  { %2120 = vsyncpa [#allocation28], 1 }
 0xc4b   :  { %2121 = vsyncpa [#allocation5], 1 }
 0xc4c   :  { %2123 = vsyncpa [#allocation5 + $0x1], 1 }

</bundles_post_ra>
